<compile_context>
chip_gen: v7x
topology: tpu7x:2x2x1
jax: 0.10.0
libtpu: 0.0.40
codegen_flags: <defaults>
</compile_context>

<pallas_src>
import functools

import jax
import jax.numpy as jnp
from jax.experimental import pallas as pl
from jax.experimental.pallas import tpu as pltpu

EPS = 1e-5


# ------------------------------------------------------------------
# Fused Inception kernel (one grid step = one batch element x one H-strip)
# ------------------------------------------------------------------
def _inception_kernel(xp_hbm, wm_ref, bm_ref, bp_ref, w33m_ref, b33m_ref,
                      w333_ref, b333_ref, o_ref,
                      xb_ref, r12b_ref, pp_ref, dma_sem, *, img_h):
    Th = xb_ref.shape[0] - 4          # strip height
    W = xb_ref.shape[1]
    He, We = Th + 2, W + 2            # 1-extended grid
    n = pl.program_id(0)
    s = pl.program_id(1)

    # ---- fetch the (Th+4)-row halo window of the H-padded input ----------
    cp = pltpu.make_async_copy(
        xp_hbm.at[n, pl.ds(s * Th, Th + 4)], xb_ref, dma_sem.at[0])
    cp.start()
    cp.wait()

    # ---- merged 1x1s: [branch1x1 | reduce | reduce_2 | pool-branch(linear)]
    xf = xb_ref[...].reshape((Th + 4) * W, 128)                       # bf16
    y = jnp.dot(xf, wm_ref[...], preferred_element_type=jnp.float32)  # (M,112)

    b1 = jnp.maximum(y[:, 0:32] + bm_ref[0, 0:32], 0.0)
    b1 = b1.reshape(Th + 4, W, 32)[2:2 + Th]                          # (Th,W,32)

    # Reduce outputs, zeroed on rows outside the real image (x's zero H-halo
    # would otherwise give relu(bias) there); interior-strip halo rows are
    # real neighbour rows and stay as-is.
    row_p = s * Th + jax.lax.broadcasted_iota(jnp.int32, (Th + 4, 1, 1), 0)
    valid = ((row_p >= 2) & (row_p < img_h + 2)).astype(jnp.float32)
    r12 = jnp.maximum(y[:, 32:80] + bm_ref[0, 32:80], 0.0)
    r12 = r12.reshape(Th + 4, W, 48) * valid

    # W halo (2 wide) lives in the scratch: keep it zero, store the interior.
    zcol2 = jnp.zeros((Th + 4, 2, 48), jnp.bfloat16)
    r12b_ref[:, 0:2, :] = zcol2
    r12b_ref[:, W + 2:W + 4, :] = zcol2
    r12b_ref[:, 2:2 + W, :] = r12.astype(jnp.bfloat16)

    # Pool-branch pre-activation (linear 1x1, no bias -> zero rows stay zero).
    ppre = y[:, 80:112].reshape(Th + 4, W, 32)[1:1 + He]              # (He,W,32)
    zcol1 = jnp.zeros((He, 1, 32), jnp.float32)
    pp_ref[:, 0:1, :] = zcol1
    pp_ref[:, W + 1:W + 2, :] = zcol1
    pp_ref[:, 1:1 + W, :] = ppre

    # ---- branch1x1_2: avg_pool(3,1,1, count_include_pad) after the 1x1 ----
    pe = pp_ref[...]                                                  # (He,We,32)
    sw = pe[:, 0:W, :] + pe[:, 1:1 + W, :] + pe[:, 2:2 + W, :]        # (He,W,32)
    pool = (sw[0:Th] + sw[1:1 + Th] + sw[2:2 + Th]) * (1.0 / 9.0)     # (Th,W,32)
    b1_2 = jnp.maximum(pool + bp_ref[0], 0.0)

    # ---- merged branch3x3 / branch3x3_2 via one im2col matmul (K=432) -----
    rp = r12b_ref[...]                                                # (Th+4,W+4,48)
    im1 = jnp.concatenate(
        [rp[dy:dy + He, dx:dx + We, :] for dy in range(3) for dx in range(3)],
        axis=-1).reshape(He * We, 9 * 48)
    z = jnp.dot(im1, w33m_ref[...], preferred_element_type=jnp.float32)
    z = jnp.maximum(z + b33m_ref[0], 0.0).reshape(He, We, 64)

    b3 = z[1:1 + Th, 1:1 + W, 0:32]                                   # (Th,W,32)

    # branch3x3_2 on the extended grid; zero positions that lie outside the
    # image so it doubles as the zero padding branch3x3_3 needs.
    er = jax.lax.broadcasted_iota(jnp.int32, (He, 1, 1), 0)
    ec = jax.lax.broadcasted_iota(jnp.int32, (1, We, 1), 1)
    gr = s * Th - 1 + er                                              # global row
    m1 = ((gr >= 0) & (gr < img_h) & (ec >= 1) & (ec <= W)).astype(jnp.float32)
    b3_2e = (z[:, :, 32:64] * m1).astype(jnp.bfloat16)                # (He,We,32)

    # ---- branch3x3_3 via im2col (K=288) ------------------------------------
    im2 = jnp.concatenate(
        [b3_2e[dy:dy + Th, dx:dx + W, :] for dy in range(3) for dx in range(3)],
        axis=-1).reshape(Th * W, 9 * 32)
    b3_3 = jnp.dot(im2, w333_ref[...], preferred_element_type=jnp.float32)
    b3_3 = jnp.maximum(b3_3 + b333_ref[0], 0.0).reshape(Th, W, 32)

    # ---- single lane-dense 128-wide store ----------------------------------
    out = jnp.concatenate([b1, b1_2, b3, b3_3], axis=-1)              # (Th,W,128)
    o_ref[0] = out.astype(o_ref.dtype)


# ------------------------------------------------------------------
# Parameter folding (BN -> conv), done ONCE outside the jitted forward
# ------------------------------------------------------------------
def _fold_bn(w, gamma, beta, mean, var):
    scale = gamma / jnp.sqrt(var + EPS)
    return w * scale[:, None, None, None], beta - mean * scale


def _prep_1x1(w, gamma, beta, mean, var):
    wf, b = _fold_bn(w, gamma, beta, mean, var)
    return wf[:, :, 0, 0].T, b                       # (Cin, Cout), (Cout,)


def _prep_3x3(w, gamma, beta, mean, var):
    wf, b = _fold_bn(w, gamma, beta, mean, var)
    cout, cin = wf.shape[0], wf.shape[1]
    wk = jnp.transpose(wf, (2, 3, 1, 0)).reshape(9, cin, cout)
    return wk, b                                     # (9, Cin, Cout), (Cout,)


def fold_inception_params(P):
    w1, b1 = _prep_1x1(*P['branch1x1'])
    wr, br = _prep_1x1(*P['branch3x3_reduce'])
    wr2, br2 = _prep_1x1(*P['branch3x3_reduce_2'])
    wp, bp = _prep_1x1(*P['branch1x1_2'])
    w3, b3 = _prep_3x3(*P['branch3x3'])              # (9, 24, 32)
    w32, b32 = _prep_3x3(*P['branch3x3_2'])          # (9, 24, 32)
    w33, b33 = _prep_3x3(*P['branch3x3_3'])          # (9, 32, 32)

    # Merged 1x1: [branch1x1 | reduce | reduce_2 | pool-branch (linear part)]
    wm = jnp.concatenate([w1, wr, wr2, wp], axis=1)          # (128, 112)
    bm = jnp.concatenate([b1, br, br2])[None, :]             # (1, 80)

    # Merged im2col weights for branch3x3 & branch3x3_2 (block-diag per tap).
    blocks = []
    for t in range(9):
        top = jnp.concatenate([w3[t], jnp.zeros((24, 32), jnp.float32)], axis=1)
        bot = jnp.concatenate([jnp.zeros((24, 32), jnp.float32), w32[t]], axis=1)
        blocks.append(jnp.concatenate([top, bot], axis=0))   # (48, 64)
    w33m = jnp.concatenate(blocks, axis=0)                   # (432, 64)
    b33m = jnp.concatenate([b3, b32])[None, :]               # (1, 64)

    w333 = w33.reshape(9 * 32, 32)                           # (288, 32)

    return {
        'wm': wm.astype(jnp.bfloat16), 'bm': bm, 'bp': bp[None, :],
        'w33m': w33m.astype(jnp.bfloat16), 'b33m': b33m,
        'w333': w333.astype(jnp.bfloat16), 'b333': b33[None, :],
    }


def init_params(key):
    def conv_bn(k, cin, cout, ks):
        kw, kg, kb, km, kv = jax.random.split(k, 5)
        w = jax.random.normal(kw, (cout, cin, ks, ks), jnp.float32) \
            * (1.0 / jnp.sqrt(cin * ks * ks))
        gamma = 1.0 + 0.1 * jax.random.normal(kg, (cout,), jnp.float32)
        beta = 0.1 * jax.random.normal(kb, (cout,), jnp.float32)
        mean = 0.1 * jax.random.normal(km, (cout,), jnp.float32)
        var = jax.nn.softplus(jax.random.normal(kv, (cout,), jnp.float32)) + 0.5
        return (w, gamma, beta, mean, var)

    ks = jax.random.split(key, 7)
    return {
        'branch1x1':          conv_bn(ks[0], 128, 32, 1),
        'branch1x1_2':        conv_bn(ks[1], 128, 32, 1),
        'branch3x3_reduce':   conv_bn(ks[2], 128, 24, 1),
        'branch3x3':          conv_bn(ks[3], 24, 32, 3),
        'branch3x3_reduce_2': conv_bn(ks[4], 128, 24, 1),
        'branch3x3_2':        conv_bn(ks[5], 24, 32, 3),
        'branch3x3_3':        conv_bn(ks[6], 32, 32, 3),
    }


# ------------------------------------------------------------------
# Inception forward (single fused, strip-tiled pallas_call)
# ------------------------------------------------------------------
def inception_forward(x_nchw, fp, *, strip_h=8):
    x = jnp.transpose(x_nchw, (0, 2, 3, 1))                   # NCHW -> NHWC
    N, H, W, C = x.shape
    if H % strip_h != 0:
        strip_h = H                # TODO(synk): ragged last strip instead
    S = H // strip_h

    # Only a 2-row H halo is padded (needed for overlapping strip windows);
    # activations are stored bf16 for the MXU.
    xp = jnp.pad(x, ((0, 0), (2, 2), (0, 0), (0, 0))).astype(jnp.bfloat16)

    weights = (fp['wm'], fp['bm'], fp['bp'], fp['w33m'], fp['b33m'],
               fp['w333'], fp['b333'])

    def _wspec(a):
        nd = a.ndim
        return pl.BlockSpec(a.shape, lambda n, s, _nd=nd: (0,) * _nd)

    kernel = functools.partial(_inception_kernel, img_h=H)

    out_nhwc = pl.pallas_call(
        kernel,
        out_shape=jax.ShapeDtypeStruct((N, H, W, 128), x_nchw.dtype),
        grid=(N, S),
        in_specs=[pl.BlockSpec(memory_space=pl.ANY)] + [_wspec(a) for a in weights],
        out_specs=pl.BlockSpec((1, strip_h, W, 128), lambda n, s: (n, s, 0, 0)),
        scratch_shapes=[
            pltpu.VMEM((strip_h + 4, W, 128), jnp.bfloat16),     # x strip window
            pltpu.VMEM((strip_h + 4, W + 4, 48), jnp.bfloat16),  # padded reduces
            pltpu.VMEM((strip_h + 2, W + 2, 32), jnp.float32),   # padded pool-pre
            pltpu.SemaphoreType.DMA((1,)),
        ],
        compiler_params=pltpu.CompilerParams(
            dimension_semantics=("parallel", "arbitrary"),
            vmem_limit_bytes=32 * 1024 * 1024),
    )(xp, *weights)

    return jnp.transpose(out_nhwc, (0, 3, 1, 2))               # NHWC -> NCHW


# ------------------------------------------------------------------
# Pure-JAX reference (verification only)
# ------------------------------------------------------------------
def _ref_basic_conv(x, w, gamma, beta, mean, var, pad):
    y = jax.lax.conv_general_dilated(
        x, w, (1, 1), [(pad, pad), (pad, pad)],
        dimension_numbers=('NCHW', 'OIHW', 'NCHW'))
    scale = gamma / jnp.sqrt(var + EPS)
    y = y * scale[None, :, None, None] + (beta - mean * scale)[None, :, None, None]
    return jnp.maximum(y, 0.0)


def ref_forward(x, P):
    b1 = _ref_basic_conv(x, *P['branch1x1'], 0)
    pool = jax.lax.reduce_window(
        x, 0.0, jax.lax.add, (1, 1, 3, 3), (1, 1, 1, 1),
        [(0, 0), (0, 0), (1, 1), (1, 1)]) / 9.0
    b1_2 = _ref_basic_conv(pool, *P['branch1x1_2'], 0)
    r = _ref_basic_conv(x, *P['branch3x3_reduce'], 0)
    b3 = _ref_basic_conv(r, *P['branch3x3'], 1)
    r2 = _ref_basic_conv(x, *P['branch3x3_reduce_2'], 0)
    b3_2 = _ref_basic_conv(r2, *P['branch3x3_2'], 1)
    b3_3 = _ref_basic_conv(b3_2, *P['branch3x3_3'], 1)
    return jnp.concatenate([b1, b1_2, b3, b3_3], axis=1)


# ------------------------------------------------------------------
if __name__ == "__main__":
    key = jax.random.PRNGKey(0)
    kx, kp = jax.random.split(key)
    # NCHW, Cin fixed to 128 by the module; small batch / spatial.
    x = jax.random.normal(kx, (2, 128, 8, 8), jnp.float32)
    P = init_params(kp)
    FP = fold_inception_params(P)            # BN folding hoisted out of forward

    # strip_h=4 -> 2 strips per batch element, exercising the seam path.
    fwd = jax.jit(functools.partial(inception_forward, strip_h=4))
    out = jax.block_until_ready(fwd(x, FP))

    ref = ref_forward(x, P)
    assert out.shape == (2, 128, 8, 8)
    # bf16 MXU path vs f32 reference -> loosened tolerance.
    assert bool(jnp.allclose(out, ref, rtol=5e-2, atol=5e-2)), \
        f"mismatch vs reference, max abs err {float(jnp.max(jnp.abs(out - ref)))}"
    print("KERNEL_OK")
</pallas_src>

<mosaic_0001>
module attributes {stable_mosaic.version = 11 : i64} {
  func.func @_inception_kernel(%arg0: i32, %arg1: i32, %arg2: memref<2x12x8x128xbf16, #tpu.memory_space<any>>, %arg3: memref<128x112xbf16, #tpu.memory_space<vmem>>, %arg4: memref<1x80xf32, #tpu.memory_space<vmem>>, %arg5: memref<1x32xf32, #tpu.memory_space<vmem>>, %arg6: memref<432x64xbf16, #tpu.memory_space<vmem>>, %arg7: memref<1x64xf32, #tpu.memory_space<vmem>>, %arg8: memref<288x32xbf16, #tpu.memory_space<vmem>>, %arg9: memref<1x32xf32, #tpu.memory_space<vmem>>, %arg10: memref<1x4x8x128xf32, #tpu.memory_space<vmem>>, %arg11: memref<8x8x128xbf16, #tpu.memory_space<vmem>>, %arg12: memref<8x12x48xbf16, #tpu.memory_space<vmem>>, %arg13: memref<6x10x32xf32, #tpu.memory_space<vmem>>, %arg14: memref<1x!tpu.dma_semaphore, #tpu.memory_space<semaphore_mem>>) attributes {dimension_semantics = [#tpu.dimension_semantics<parallel>, #tpu.dimension_semantics<arbitrary>], iteration_bounds = array<i64: 2, 2>, scalar_prefetch = 0 : i64, scratch_operands = 4 : i64, tpu.core_type = #tpu.core_type<tc>, window_params = [{}, {pipeline_mode = #tpu.pipeline_mode<synchronous>, transform_indices = @transform_1, window_bounds = array<i64: 128, 112>}, {pipeline_mode = #tpu.pipeline_mode<synchronous>, transform_indices = @transform_2, window_bounds = array<i64: 1, 80>}, {pipeline_mode = #tpu.pipeline_mode<synchronous>, transform_indices = @transform_3, window_bounds = array<i64: 1, 32>}, {pipeline_mode = #tpu.pipeline_mode<synchronous>, transform_indices = @transform_4, window_bounds = array<i64: 432, 64>}, {pipeline_mode = #tpu.pipeline_mode<synchronous>, transform_indices = @transform_5, window_bounds = array<i64: 1, 64>}, {pipeline_mode = #tpu.pipeline_mode<synchronous>, transform_indices = @transform_6, window_bounds = array<i64: 288, 32>}, {pipeline_mode = #tpu.pipeline_mode<synchronous>, transform_indices = @transform_7, window_bounds = array<i64: 1, 32>}, {transform_indices = @transform_8, window_bounds = array<i64: 1, 4, 8, 128>}]} {
    %c4_i32 = arith.constant 4 : i32
    %0 = arith.muli %arg1, %c4_i32 : i32
    %c0_i32 = arith.constant 0 : i32
    %c0_i32_0 = arith.constant 0 : i32
    %c0_i32_1 = arith.constant 0 : i32
    %1 = tpu.memref_slice %arg2[%arg0, %0, %c0_i32_0, %c0_i32_1] : memref<2x12x8x128xbf16, #tpu.memory_space<any>> -> memref<1x8x8x128xbf16, #tpu.memory_space<any>>
    %2 = tpu.memref_squeeze %1 : memref<1x8x8x128xbf16, #tpu.memory_space<any>> -> memref<8x8x128xbf16, #tpu.memory_space<any>>
    %3 = tpu.memref_slice %arg14[%c0_i32] : memref<1x!tpu.dma_semaphore, #tpu.memory_space<semaphore_mem>> -> memref<1x!tpu.dma_semaphore, #tpu.memory_space<semaphore_mem>>
    %4 = tpu.memref_squeeze %3 : memref<1x!tpu.dma_semaphore, #tpu.memory_space<semaphore_mem>> -> memref<!tpu.dma_semaphore, #tpu.memory_space<semaphore_mem>>
    tpu.enqueue_dma source(%2 : memref<8x8x128xbf16, #tpu.memory_space<any>>) target(%arg11 : memref<8x8x128xbf16, #tpu.memory_space<vmem>>) target_semaphore(%4 : memref<!tpu.dma_semaphore, #tpu.memory_space<semaphore_mem>>)
    %c0_i32_2 = arith.constant 0 : i32
    %c0_i32_3 = arith.constant 0 : i32
    %c0_i32_4 = arith.constant 0 : i32
    %5 = tpu.memref_slice %arg2[%arg0, %0, %c0_i32_3, %c0_i32_4] : memref<2x12x8x128xbf16, #tpu.memory_space<any>> -> memref<1x8x8x128xbf16, #tpu.memory_space<any>>
    %6 = tpu.memref_squeeze %5 : memref<1x8x8x128xbf16, #tpu.memory_space<any>> -> memref<8x8x128xbf16, #tpu.memory_space<any>>
    %7 = tpu.memref_slice %arg14[%c0_i32_2] : memref<1x!tpu.dma_semaphore, #tpu.memory_space<semaphore_mem>> -> memref<1x!tpu.dma_semaphore, #tpu.memory_space<semaphore_mem>>
    %8 = tpu.memref_squeeze %7 : memref<1x!tpu.dma_semaphore, #tpu.memory_space<semaphore_mem>> -> memref<!tpu.dma_semaphore, #tpu.memory_space<semaphore_mem>>
    tpu.wait_dma2 semaphore(%8 : memref<!tpu.dma_semaphore, #tpu.memory_space<semaphore_mem>>) src(%6 : memref<8x8x128xbf16, #tpu.memory_space<any>>) dst(%arg11 : memref<8x8x128xbf16, #tpu.memory_space<vmem>>)
    %c0 = arith.constant 0 : index
    %c0_5 = arith.constant 0 : index
    %c0_6 = arith.constant 0 : index
    %9 = vector.load %arg11[%c0, %c0_5, %c0_6] : memref<8x8x128xbf16, #tpu.memory_space<vmem>>, vector<8x8x128xbf16>
    %10 = vector.shape_cast %9 : vector<8x8x128xbf16> to vector<64x128xbf16>
    %c0_7 = arith.constant 0 : index
    %c0_8 = arith.constant 0 : index
    %11 = vector.load %arg3[%c0_7, %c0_8] : memref<128x112xbf16, #tpu.memory_space<vmem>>, vector<128x112xbf16>
    %cst = arith.constant dense<0.000000e+00> : vector<64x112xf32>
    %12 = tpu.matmul %10, %11, %cst {dimension_numbers = #tpu.dot_dimension_numbers<[1], [0], [0], [1], [0, 0, 1, 1], [], []>} : vector<64x128xbf16>, vector<128x112xbf16>, vector<64x112xf32> -> vector<64x112xf32>
    %13 = vector.extract_strided_slice %12 {offsets = [0, 0], sizes = [64, 32], strides = [1, 1]} : vector<64x112xf32> to vector<64x32xf32>
    %c0_9 = arith.constant 0 : index
    %c0_10 = arith.constant 0 : index
    %14 = vector.load %arg4[%c0_9, %c0_10] : memref<1x80xf32, #tpu.memory_space<vmem>>, vector<1x32xf32>
    %15 = vector.shape_cast %14 : vector<1x32xf32> to vector<32xf32>
    %16 = vector.shape_cast %15 : vector<32xf32> to vector<1x32xf32>
    %17 = vector.broadcast %16 : vector<1x32xf32> to vector<64x32xf32>
    %18 = arith.addf %13, %17 : vector<64x32xf32>
    %cst_11 = arith.constant 0.000000e+00 : f32
    %19 = vector.broadcast %cst_11 : f32 to vector<64x32xf32>
    %20 = arith.maximumf %18, %19 : vector<64x32xf32>
    %21 = vector.shape_cast %20 : vector<64x32xf32> to vector<8x8x32xf32>
    %22 = vector.extract_strided_slice %21 {offsets = [2, 0, 0], sizes = [4, 8, 32], strides = [1, 1, 1]} : vector<8x8x32xf32> to vector<4x8x32xf32>
    %c4_i32_12 = arith.constant 4 : i32
    %23 = arith.muli %arg1, %c4_i32_12 : i32
    %24 = tpu.iota {dimensions = array<i32: 0>} : vector<8x1x1xi32>
    %25 = vector.broadcast %23 : i32 to vector<8x1x1xi32>
    %26 = arith.addi %25, %24 : vector<8x1x1xi32>
    %c2_i32 = arith.constant 2 : i32
    %27 = vector.broadcast %c2_i32 : i32 to vector<8x1x1xi32>
    %28 = arith.cmpi sge, %26, %27 : vector<8x1x1xi32>
    %c10_i32 = arith.constant 10 : i32
    %29 = vector.broadcast %c10_i32 : i32 to vector<8x1x1xi32>
    %30 = arith.cmpi slt, %26, %29 : vector<8x1x1xi32>
    %31 = arith.andi %28, %30 : vector<8x1x1xi1>
    %32 = arith.extui %31 : vector<8x1x1xi1> to vector<8x1x1xi32>
    %33 = arith.sitofp %32 : vector<8x1x1xi32> to vector<8x1x1xf32>
    %34 = vector.extract_strided_slice %12 {offsets = [0, 32], sizes = [64, 48], strides = [1, 1]} : vector<64x112xf32> to vector<64x48xf32>
    %c0_13 = arith.constant 0 : index
    %c32 = arith.constant 32 : index
    %35 = vector.load %arg4[%c0_13, %c32] : memref<1x80xf32, #tpu.memory_space<vmem>>, vector<1x48xf32>
    %36 = vector.shape_cast %35 : vector<1x48xf32> to vector<48xf32>
    %37 = vector.shape_cast %36 : vector<48xf32> to vector<1x48xf32>
    %38 = vector.broadcast %37 : vector<1x48xf32> to vector<64x48xf32>
    %39 = arith.addf %34, %38 : vector<64x48xf32>
    %cst_14 = arith.constant 0.000000e+00 : f32
    %40 = vector.broadcast %cst_14 : f32 to vector<64x48xf32>
    %41 = arith.maximumf %39, %40 : vector<64x48xf32>
    %42 = vector.shape_cast %41 : vector<64x48xf32> to vector<8x8x48xf32>
    %43 = vector.broadcast %33 : vector<8x1x1xf32> to vector<8x8x48xf32>
    %44 = arith.mulf %42, %43 : vector<8x8x48xf32>
    %cst_15 = arith.constant 0.000000e+00 : bf16
    %45 = vector.broadcast %cst_15 : bf16 to vector<8x2x48xbf16>
    %c0_16 = arith.constant 0 : index
    %c0_17 = arith.constant 0 : index
    %c0_18 = arith.constant 0 : index
    %46 = vector.load %arg12[%c0_16, %c0_17, %c0_18] : memref<8x12x48xbf16, #tpu.memory_space<vmem>>, vector<8x2x48xbf16>
    tpu.vector_store %arg12[%c0_16, %c0_17, %c0_18], %45 {strides = array<i32>} : memref<8x12x48xbf16, #tpu.memory_space<vmem>>, vector<8x2x48xbf16>,
    %c0_19 = arith.constant 0 : index
    %c10 = arith.constant 10 : index
    %c0_20 = arith.constant 0 : index
    %47 = vector.load %arg12[%c0_19, %c10, %c0_20] : memref<8x12x48xbf16, #tpu.memory_space<vmem>>, vector<8x2x48xbf16>
    tpu.vector_store %arg12[%c0_19, %c10, %c0_20], %45 {strides = array<i32>} : memref<8x12x48xbf16, #tpu.memory_space<vmem>>, vector<8x2x48xbf16>,
    %48 = arith.truncf %44 : vector<8x8x48xf32> to vector<8x8x48xbf16>
    %c0_21 = arith.constant 0 : index
    %c2 = arith.constant 2 : index
    %c0_22 = arith.constant 0 : index
    %49 = vector.load %arg12[%c0_21, %c2, %c0_22] : memref<8x12x48xbf16, #tpu.memory_space<vmem>>, vector<8x8x48xbf16>
    tpu.vector_store %arg12[%c0_21, %c2, %c0_22], %48 {strides = array<i32>} : memref<8x12x48xbf16, #tpu.memory_space<vmem>>, vector<8x8x48xbf16>,
    %50 = vector.extract_strided_slice %12 {offsets = [0, 80], sizes = [64, 32], strides = [1, 1]} : vector<64x112xf32> to vector<64x32xf32>
    %51 = vector.shape_cast %50 : vector<64x32xf32> to vector<8x8x32xf32>
    %52 = vector.extract_strided_slice %51 {offsets = [1, 0, 0], sizes = [6, 8, 32], strides = [1, 1, 1]} : vector<8x8x32xf32> to vector<6x8x32xf32>
    %cst_23 = arith.constant 0.000000e+00 : f32
    %53 = vector.broadcast %cst_23 : f32 to vector<6x1x32xf32>
    %c0_24 = arith.constant 0 : index
    %c0_25 = arith.constant 0 : index
    %c0_26 = arith.constant 0 : index
    %54 = vector.load %arg13[%c0_24, %c0_25, %c0_26] : memref<6x10x32xf32, #tpu.memory_space<vmem>>, vector<6x1x32xf32>
    tpu.vector_store %arg13[%c0_24, %c0_25, %c0_26], %53 {strides = array<i32>} : memref<6x10x32xf32, #tpu.memory_space<vmem>>, vector<6x1x32xf32>,
    %c0_27 = arith.constant 0 : index
    %c9 = arith.constant 9 : index
    %c0_28 = arith.constant 0 : index
    %55 = vector.load %arg13[%c0_27, %c9, %c0_28] : memref<6x10x32xf32, #tpu.memory_space<vmem>>, vector<6x1x32xf32>
    tpu.vector_store %arg13[%c0_27, %c9, %c0_28], %53 {strides = array<i32>} : memref<6x10x32xf32, #tpu.memory_space<vmem>>, vector<6x1x32xf32>,
    %c0_29 = arith.constant 0 : index
    %c1 = arith.constant 1 : index
    %c0_30 = arith.constant 0 : index
    %56 = vector.load %arg13[%c0_29, %c1, %c0_30] : memref<6x10x32xf32, #tpu.memory_space<vmem>>, vector<6x8x32xf32>
    tpu.vector_store %arg13[%c0_29, %c1, %c0_30], %52 {strides = array<i32>} : memref<6x10x32xf32, #tpu.memory_space<vmem>>, vector<6x8x32xf32>,
    %c0_31 = arith.constant 0 : index
    %c0_32 = arith.constant 0 : index
    %c0_33 = arith.constant 0 : index
    %57 = vector.load %arg13[%c0_31, %c0_32, %c0_33] : memref<6x10x32xf32, #tpu.memory_space<vmem>>, vector<6x10x32xf32>
    %58 = vector.extract_strided_slice %57 {offsets = [0, 0, 0], sizes = [6, 8, 32], strides = [1, 1, 1]} : vector<6x10x32xf32> to vector<6x8x32xf32>
    %59 = vector.extract_strided_slice %57 {offsets = [0, 1, 0], sizes = [6, 8, 32], strides = [1, 1, 1]} : vector<6x10x32xf32> to vector<6x8x32xf32>
    %60 = arith.addf %58, %59 : vector<6x8x32xf32>
    %61 = vector.extract_strided_slice %57 {offsets = [0, 2, 0], sizes = [6, 8, 32], strides = [1, 1, 1]} : vector<6x10x32xf32> to vector<6x8x32xf32>
    %62 = arith.addf %60, %61 : vector<6x8x32xf32>
    %63 = vector.extract_strided_slice %62 {offsets = [0, 0, 0], sizes = [4, 8, 32], strides = [1, 1, 1]} : vector<6x8x32xf32> to vector<4x8x32xf32>
    %64 = vector.extract_strided_slice %62 {offsets = [1, 0, 0], sizes = [4, 8, 32], strides = [1, 1, 1]} : vector<6x8x32xf32> to vector<4x8x32xf32>
    %65 = arith.addf %63, %64 : vector<4x8x32xf32>
    %66 = vector.extract_strided_slice %62 {offsets = [2, 0, 0], sizes = [4, 8, 32], strides = [1, 1, 1]} : vector<6x8x32xf32> to vector<4x8x32xf32>
    %67 = arith.addf %65, %66 : vector<4x8x32xf32>
    %cst_34 = arith.constant 0.111111112 : f32
    %68 = vector.broadcast %cst_34 : f32 to vector<4x8x32xf32>
    %69 = arith.mulf %67, %68 : vector<4x8x32xf32>
    %c0_35 = arith.constant 0 : index
    %c0_36 = arith.constant 0 : index
    %70 = vector.load %arg5[%c0_35, %c0_36] : memref<1x32xf32, #tpu.memory_space<vmem>>, vector<1x32xf32>
    %71 = vector.shape_cast %70 : vector<1x32xf32> to vector<32xf32>
    %72 = vector.shape_cast %71 : vector<32xf32> to vector<1x1x32xf32>
    %73 = vector.broadcast %72 : vector<1x1x32xf32> to vector<4x8x32xf32>
    %74 = arith.addf %69, %73 : vector<4x8x32xf32>
    %cst_37 = arith.constant 0.000000e+00 : f32
    %75 = vector.broadcast %cst_37 : f32 to vector<4x8x32xf32>
    %76 = arith.maximumf %74, %75 : vector<4x8x32xf32>
    %c0_38 = arith.constant 0 : index
    %c0_39 = arith.constant 0 : index
    %c0_40 = arith.constant 0 : index
    %77 = vector.load %arg12[%c0_38, %c0_39, %c0_40] : memref<8x12x48xbf16, #tpu.memory_space<vmem>>, vector<8x12x48xbf16>
    %78 = vector.extract_strided_slice %77 {offsets = [0, 0, 0], sizes = [6, 10, 48], strides = [1, 1, 1]} : vector<8x12x48xbf16> to vector<6x10x48xbf16>
    %79 = vector.extract_strided_slice %77 {offsets = [0, 1, 0], sizes = [6, 10, 48], strides = [1, 1, 1]} : vector<8x12x48xbf16> to vector<6x10x48xbf16>
    %80 = vector.extract_strided_slice %77 {offsets = [0, 2, 0], sizes = [6, 10, 48], strides = [1, 1, 1]} : vector<8x12x48xbf16> to vector<6x10x48xbf16>
    %81 = vector.extract_strided_slice %77 {offsets = [1, 0, 0], sizes = [6, 10, 48], strides = [1, 1, 1]} : vector<8x12x48xbf16> to vector<6x10x48xbf16>
    %82 = vector.extract_strided_slice %77 {offsets = [1, 1, 0], sizes = [6, 10, 48], strides = [1, 1, 1]} : vector<8x12x48xbf16> to vector<6x10x48xbf16>
    %83 = vector.extract_strided_slice %77 {offsets = [1, 2, 0], sizes = [6, 10, 48], strides = [1, 1, 1]} : vector<8x12x48xbf16> to vector<6x10x48xbf16>
    %84 = vector.extract_strided_slice %77 {offsets = [2, 0, 0], sizes = [6, 10, 48], strides = [1, 1, 1]} : vector<8x12x48xbf16> to vector<6x10x48xbf16>
    %85 = vector.extract_strided_slice %77 {offsets = [2, 1, 0], sizes = [6, 10, 48], strides = [1, 1, 1]} : vector<8x12x48xbf16> to vector<6x10x48xbf16>
    %86 = vector.extract_strided_slice %77 {offsets = [2, 2, 0], sizes = [6, 10, 48], strides = [1, 1, 1]} : vector<8x12x48xbf16> to vector<6x10x48xbf16>
    %87 = tpu.concatenate %78, %79, %80, %81, %82, %83, %84, %85, %86 in 2 : vector<6x10x48xbf16>, vector<6x10x48xbf16>, vector<6x10x48xbf16>, vector<6x10x48xbf16>, vector<6x10x48xbf16>, vector<6x10x48xbf16>, vector<6x10x48xbf16>, vector<6x10x48xbf16>, vector<6x10x48xbf16> -> vector<6x10x432xbf16>
    %88 = vector.shape_cast %87 : vector<6x10x432xbf16> to vector<60x432xbf16>
    %c0_41 = arith.constant 0 : index
    %c0_42 = arith.constant 0 : index
    %89 = vector.load %arg6[%c0_41, %c0_42] : memref<432x64xbf16, #tpu.memory_space<vmem>>, vector<432x64xbf16>
    %cst_43 = arith.constant dense<0.000000e+00> : vector<60x64xf32>
    %90 = tpu.matmul %88, %89, %cst_43 {dimension_numbers = #tpu.dot_dimension_numbers<[1], [0], [0], [1], [0, 0, 1, 1], [], []>} : vector<60x432xbf16>, vector<432x64xbf16>, vector<60x64xf32> -> vector<60x64xf32>
    %c0_44 = arith.constant 0 : index
    %c0_45 = arith.constant 0 : index
    %91 = vector.load %arg7[%c0_44, %c0_45] : memref<1x64xf32, #tpu.memory_space<vmem>>, vector<1x64xf32>
    %92 = vector.shape_cast %91 : vector<1x64xf32> to vector<64xf32>
    %93 = vector.shape_cast %92 : vector<64xf32> to vector<1x64xf32>
    %94 = vector.broadcast %93 : vector<1x64xf32> to vector<60x64xf32>
    %95 = arith.addf %90, %94 : vector<60x64xf32>
    %cst_46 = arith.constant 0.000000e+00 : f32
    %96 = vector.broadcast %cst_46 : f32 to vector<60x64xf32>
    %97 = arith.maximumf %95, %96 : vector<60x64xf32>
    %98 = vector.shape_cast %97 : vector<60x64xf32> to vector<6x10x64xf32>
    %99 = vector.extract_strided_slice %98 {offsets = [1, 1, 0], sizes = [4, 8, 32], strides = [1, 1, 1]} : vector<6x10x64xf32> to vector<4x8x32xf32>
    %100 = tpu.iota {dimensions = array<i32: 0>} : vector<6x1x1xi32>
    %101 = tpu.iota {dimensions = array<i32: 1>} : vector<1x10x1xi32>
    %c4_i32_47 = arith.constant 4 : i32
    %102 = arith.muli %arg1, %c4_i32_47 : i32
    %c1_i32 = arith.constant 1 : i32
    %103 = arith.subi %102, %c1_i32 : i32
    %104 = vector.broadcast %103 : i32 to vector<6x1x1xi32>
    %105 = arith.addi %104, %100 : vector<6x1x1xi32>
    %c0_i32_48 = arith.constant 0 : i32
    %106 = vector.broadcast %c0_i32_48 : i32 to vector<6x1x1xi32>
    %107 = arith.cmpi sge, %105, %106 : vector<6x1x1xi32>
    %c8_i32 = arith.constant 8 : i32
    %108 = vector.broadcast %c8_i32 : i32 to vector<6x1x1xi32>
    %109 = arith.cmpi slt, %105, %108 : vector<6x1x1xi32>
    %110 = arith.andi %107, %109 : vector<6x1x1xi1>
    %c1_i32_49 = arith.constant 1 : i32
    %111 = vector.broadcast %c1_i32_49 : i32 to vector<1x10x1xi32>
    %112 = arith.cmpi sge, %101, %111 : vector<1x10x1xi32>
    %113 = vector.broadcast %110 : vector<6x1x1xi1> to vector<6x10x1xi1>
    %114 = vector.broadcast %112 : vector<1x10x1xi1> to vector<6x10x1xi1>
    %115 = arith.andi %113, %114 : vector<6x10x1xi1>
    %c8_i32_50 = arith.constant 8 : i32
    %116 = vector.broadcast %c8_i32_50 : i32 to vector<1x10x1xi32>
    %117 = arith.cmpi sle, %101, %116 : vector<1x10x1xi32>
    %118 = vector.broadcast %117 : vector<1x10x1xi1> to vector<6x10x1xi1>
    %119 = arith.andi %115, %118 : vector<6x10x1xi1>
    %120 = arith.extui %119 : vector<6x10x1xi1> to vector<6x10x1xi32>
    %121 = arith.sitofp %120 : vector<6x10x1xi32> to vector<6x10x1xf32>
    %122 = vector.extract_strided_slice %98 {offsets = [0, 0, 32], sizes = [6, 10, 32], strides = [1, 1, 1]} : vector<6x10x64xf32> to vector<6x10x32xf32>
    %123 = vector.broadcast %121 : vector<6x10x1xf32> to vector<6x10x32xf32>
    %124 = arith.mulf %122, %123 : vector<6x10x32xf32>
    %125 = arith.truncf %124 : vector<6x10x32xf32> to vector<6x10x32xbf16>
    %126 = vector.extract_strided_slice %125 {offsets = [0, 0, 0], sizes = [4, 8, 32], strides = [1, 1, 1]} : vector<6x10x32xbf16> to vector<4x8x32xbf16>
    %127 = vector.extract_strided_slice %125 {offsets = [0, 1, 0], sizes = [4, 8, 32], strides = [1, 1, 1]} : vector<6x10x32xbf16> to vector<4x8x32xbf16>
    %128 = vector.extract_strided_slice %125 {offsets = [0, 2, 0], sizes = [4, 8, 32], strides = [1, 1, 1]} : vector<6x10x32xbf16> to vector<4x8x32xbf16>
    %129 = vector.extract_strided_slice %125 {offsets = [1, 0, 0], sizes = [4, 8, 32], strides = [1, 1, 1]} : vector<6x10x32xbf16> to vector<4x8x32xbf16>
    %130 = vector.extract_strided_slice %125 {offsets = [1, 1, 0], sizes = [4, 8, 32], strides = [1, 1, 1]} : vector<6x10x32xbf16> to vector<4x8x32xbf16>
    %131 = vector.extract_strided_slice %125 {offsets = [1, 2, 0], sizes = [4, 8, 32], strides = [1, 1, 1]} : vector<6x10x32xbf16> to vector<4x8x32xbf16>
    %132 = vector.extract_strided_slice %125 {offsets = [2, 0, 0], sizes = [4, 8, 32], strides = [1, 1, 1]} : vector<6x10x32xbf16> to vector<4x8x32xbf16>
    %133 = vector.extract_strided_slice %125 {offsets = [2, 1, 0], sizes = [4, 8, 32], strides = [1, 1, 1]} : vector<6x10x32xbf16> to vector<4x8x32xbf16>
    %134 = vector.extract_strided_slice %125 {offsets = [2, 2, 0], sizes = [4, 8, 32], strides = [1, 1, 1]} : vector<6x10x32xbf16> to vector<4x8x32xbf16>
    %135 = tpu.concatenate %126, %127, %128, %129, %130, %131, %132, %133, %134 in 2 : vector<4x8x32xbf16>, vector<4x8x32xbf16>, vector<4x8x32xbf16>, vector<4x8x32xbf16>, vector<4x8x32xbf16>, vector<4x8x32xbf16>, vector<4x8x32xbf16>, vector<4x8x32xbf16>, vector<4x8x32xbf16> -> vector<4x8x288xbf16>
    %136 = vector.shape_cast %135 : vector<4x8x288xbf16> to vector<32x288xbf16>
    %c0_51 = arith.constant 0 : index
    %c0_52 = arith.constant 0 : index
    %137 = vector.load %arg8[%c0_51, %c0_52] : memref<288x32xbf16, #tpu.memory_space<vmem>>, vector<288x32xbf16>
    %cst_53 = arith.constant dense<0.000000e+00> : vector<32x32xf32>
    %138 = tpu.matmul %136, %137, %cst_53 {dimension_numbers = #tpu.dot_dimension_numbers<[1], [0], [0], [1], [0, 0, 1, 1], [], []>} : vector<32x288xbf16>, vector<288x32xbf16>, vector<32x32xf32> -> vector<32x32xf32>
    %c0_54 = arith.constant 0 : index
    %c0_55 = arith.constant 0 : index
    %139 = vector.load %arg9[%c0_54, %c0_55] : memref<1x32xf32, #tpu.memory_space<vmem>>, vector<1x32xf32>
    %140 = vector.shape_cast %139 : vector<1x32xf32> to vector<32xf32>
    %141 = vector.shape_cast %140 : vector<32xf32> to vector<1x32xf32>
    %142 = vector.broadcast %141 : vector<1x32xf32> to vector<32x32xf32>
    %143 = arith.addf %138, %142 : vector<32x32xf32>
    %cst_56 = arith.constant 0.000000e+00 : f32
    %144 = vector.broadcast %cst_56 : f32 to vector<32x32xf32>
    %145 = arith.maximumf %143, %144 : vector<32x32xf32>
    %146 = vector.shape_cast %145 : vector<32x32xf32> to vector<4x8x32xf32>
    %147 = tpu.concatenate %22, %76, %99, %146 in 2 : vector<4x8x32xf32>, vector<4x8x32xf32>, vector<4x8x32xf32>, vector<4x8x32xf32> -> vector<4x8x128xf32>
    %c0_57 = arith.constant 0 : index
    %c0_58 = arith.constant 0 : index
    %c0_59 = arith.constant 0 : index
    %c0_60 = arith.constant 0 : index
    %148 = vector.load %arg10[%c0_57, %c0_58, %c0_59, %c0_60] : memref<1x4x8x128xf32, #tpu.memory_space<vmem>>, vector<1x4x8x128xf32>
    %149 = vector.shape_cast %148 : vector<1x4x8x128xf32> to vector<4x8x128xf32>
    %150 = vector.shape_cast %147 : vector<4x8x128xf32> to vector<1x4x8x128xf32>
    tpu.vector_store %arg10[%c0_57, %c0_58, %c0_59, %c0_60], %150 {strides = array<i32>} : memref<1x4x8x128xf32, #tpu.memory_space<vmem>>, vector<1x4x8x128xf32>,
    return
  }
  func.func @transform_1(%arg0: i32, %arg1: i32) -> (i32, i32) {
    %c0_i32 = arith.constant 0 : i32
    %c0_i32_0 = arith.constant 0 : i32
    %c0_i32_1 = arith.constant 0 : i32
    return %c0_i32, %c0_i32_0 : i32, i32
  }
  func.func @transform_2(%arg0: i32, %arg1: i32) -> (i32, i32) {
    %c0_i32 = arith.constant 0 : i32
    %c0_i32_0 = arith.constant 0 : i32
    %c0_i32_1 = arith.constant 0 : i32
    return %c0_i32, %c0_i32_0 : i32, i32
  }
  func.func @transform_3(%arg0: i32, %arg1: i32) -> (i32, i32) {
    %c0_i32 = arith.constant 0 : i32
    %c0_i32_0 = arith.constant 0 : i32
    %c0_i32_1 = arith.constant 0 : i32
    return %c0_i32, %c0_i32_0 : i32, i32
  }
  func.func @transform_4(%arg0: i32, %arg1: i32) -> (i32, i32) {
    %c0_i32 = arith.constant 0 : i32
    %c0_i32_0 = arith.constant 0 : i32
    %c0_i32_1 = arith.constant 0 : i32
    return %c0_i32, %c0_i32_0 : i32, i32
  }
  func.func @transform_5(%arg0: i32, %arg1: i32) -> (i32, i32) {
    %c0_i32 = arith.constant 0 : i32
    %c0_i32_0 = arith.constant 0 : i32
    %c0_i32_1 = arith.constant 0 : i32
    return %c0_i32, %c0_i32_0 : i32, i32
  }
  func.func @transform_6(%arg0: i32, %arg1: i32) -> (i32, i32) {
    %c0_i32 = arith.constant 0 : i32
    %c0_i32_0 = arith.constant 0 : i32
    %c0_i32_1 = arith.constant 0 : i32
    return %c0_i32, %c0_i32_0 : i32, i32
  }
  func.func @transform_7(%arg0: i32, %arg1: i32) -> (i32, i32) {
    %c0_i32 = arith.constant 0 : i32
    %c0_i32_0 = arith.constant 0 : i32
    %c0_i32_1 = arith.constant 0 : i32
    return %c0_i32, %c0_i32_0 : i32, i32
  }
  func.func @transform_8(%arg0: i32, %arg1: i32) -> (i32, i32, i32, i32) {
    %c0_i32 = arith.constant 0 : i32
    %c0_i32_0 = arith.constant 0 : i32
    %c0_i32_1 = arith.constant 0 : i32
    return %arg0, %arg1, %c0_i32, %c0_i32_0 : i32, i32, i32, i32
  }
}

</mosaic_0001>

<bundles_post_ra>
// kernel: inception_forward.1
= control target key start
LH: loop header
LB: loop body
LE: loop exit
PB: predicated region body
PF: predicated region fallthrough
CT: control target
= control target key end

     0   :  { %13 = vsyncpa [#allocation7], 0  ;;  %s5641_s0 = inlined_call_operand.vmem [shape: bf16[2,12,8,128], index: 0, kind: input, shape index: {}]   ;;  %s5642_s1 = inlined_call_operand.vmem [shape: bf16[128,112], index: 1, kind: input, shape index: {}]   ;;  %s5643_s2 = inlined_call_operand.vmem [shape: f32[1,80], index: 2, kind: input, shape index: {}]   ;;  %s5644_s3 = inlined_call_operand.vmem [shape: f32[1,32], index: 3, kind: input, shape index: {}]   ;;  %s5645_s4 = inlined_call_operand.vmem [shape: bf16[432,64], index: 4, kind: input, shape index: {}]   ;;  %s5646_s5 = inlined_call_operand.vmem [shape: f32[1,64], index: 5, kind: input, shape index: {}]   ;;  %s5647_s6 = inlined_call_operand.vmem [shape: bf16[288,32], index: 6, kind: input, shape index: {}]   ;;  %s5648_s7 = inlined_call_operand.vmem [shape: f32[1,32], index: 7, kind: input, shape index: {}]   ;;  %s5649_s8 = inlined_call_operand.hbm [shape: f32[2,8,8,128], index: 8, kind: output, shape index: {}]  }
   0x1   :  { %15 = vsyncpa [#allocation7 + $0x1], 0  ;;  %s4194_s27 = smov 0   ;;  %s4196_s28 = smov 0  }
   0x2   :  { %s4198_s29 = smov 0   ;;  %s4200_s30 = smov 0  }
   0x3   :  { %s4202_s9 = smov 0   ;;  %s4204_s10 = smov 0  }
   0x4   :  { %s4206_s11 = smov 0   ;;  %s4208_s12 = smov 0  }
   0x5 LB: > { %s3629_s13 = sadd.s32 4294967295, %s4129_s12   ;;  %s3630_s14 = sadd.s32 4294967294, %s4129_s12   ;;  %s4129_s12 = sphi %s4208_s12, %s21_s12   ;;  %s4125_s11 = sphi %s4206_s11, %s5731_s11   ;;  %s4121_s10 = sphi %s4204_s10, %s5730_s10   ;;  %s4117_s9 = sphi %s4202_s9, %s5729_s9   ;;  %s4113_s30 = sphi %s4200_s30, %s5728_s30   ;;  %s4109_s29 = sphi %s4198_s29, %s5727_s29   ;;  %s4105_s28 = sphi %s4196_s28, %s5726_s28   ;;  %s4101_s27 = sphi %s4194_s27, %s5725_s27  }
   0x6   : > { %s30_s15 = sadd.s32 1, %s4121_s10  ;;  %s33_s16 = sadd.s32 1, %s4125_s11 }
   0x7   : > { %p31_p0 = scmp.ge.s32.totalorder %s30_s15, 2  ;;  %p199_p1 = scmp.ne.s32.totalorder %s4109_s29, %s4105_s28 }
   0x8   : > { %p200_p2 = scmp.eq.s32.totalorder %s3629_s13, 3  ;;  %p205_p5 = scmp.ne.s32.totalorder %s4105_s28, %s4101_s27 }
   0x9   : > { %s5733_s15 = smov (%p31_p0, %s30_s15), 0  ;;  %s5735_s16 = smov (!%p31_p0, %s33_s16), %s4125_s11 }
   0xa   : > { %5671 = sst [smem:[#allocation11_spill]] %s5733_s15  ;;  %s185_s17 = ssub.s32 %s4121_s10, %s5733_s15 }
   0xb   : > { %p4245_p3 = por %p200_p2, %p199_p1  ;;  %p35_p4 = scmp.ge.s32.totalorder %s5735_s16, 2 }
   0xc   : > { %p206_p6 = scmp.eq.s32.totalorder %s3630_s14, 3  ;;  %p3632_p7 = scmp.ge.s32.totalorder %s4129_s12, 1 }
   0xd   : > { %s5737_s16 = smov (%p35_p4, %s5735_s16), 0  ;;  %p245_p9 = scmp.lt.s32.totalorder %s4129_s12, 5 }
   0xe   : > { %5673 = sst [smem:[#allocation12_spill]] %s5737_s16  ;;  %p4254_p8 = por %p206_p6, %p205_p5 }
   0xf   : > { %s184_s20 = ssub.s32 %s4125_s11, %s5737_s16  ;;  %s189_s21 = sadd.s32 1, %s4109_s29 }
  0x10   : > { %s186_s22 = sor.u32 %s185_s17, %s184_s20  ;;  %p246_p10 = pnand %p3632_p7, %p245_p9 }
  0x11   : > { %p187_p11 = scmp.eq.s32.totalorder %s186_s22, 0  ;;  %s5652_s24 = sand.u32 (!%p246_p10), 1, %s4105_s28  }
  0x12   : > { %249 = sbr.rel (%p246_p10) target bundleno = 1385 (0x569), region = 48  ;;  %s4267_s25 = sshll.u32 (!%p246_p10), %s4113_s30, 2 }
  0x13   : > { %s4263_s23 = scalar_select %p187_p11, %s4109_s29, %s189_s21  }
  0x14   : > { %s3633_s26 = sshll.u32 (!%p246_p10), %s5652_s24, 5  ;;  %s275_s13 = smul.u32 (!%p246_p10), 12, %s4117_s9 }
  0x15   : > { %s4276_s30 = scalar_lea.vmem (!%p246_p10), [#allocation6], %s3633_s26 }
  0x16   : > { %s276_s14 = sadd.s32 (!%p246_p10), %s4267_s25, %s275_s13 }
  0x17   : > { %s3635_s16 = sshll.u32 (!%p246_p10), %s276_s14, 2 }
  0x18   : > { %s278_s20 = scalar_lea.vmem (!%p246_p10), %s5641_s0, %s3635_s16 }
  0x19   : > { %v311_v0 = vld [vmem:[%s278_s20] sm:$0xff]  ;;  %v313_v1 = vld [vmem:[%s278_s20 + $0x8] sm:$0xff]  ;;  %v315_v2 = vld [vmem:[%s278_s20 + $0x10] sm:$0xff] }
  0x1a   : > { %312 = vst [vmem:[#allocation2] sm:$0xff] %v311_v0  ;;  %314 = vst [vmem:[#allocation2 + $0x8] sm:$0xff] %v313_v1  ;;  %v317_v3 = vld [vmem:[%s278_s20 + $0x18] sm:$0xff] }
  0x1b   : > { %316 = vst [vmem:[#allocation2 + $0x10] sm:$0xff] %v315_v2  ;;  %318 = vst [vmem:[#allocation2 + $0x18] sm:$0xff] %v317_v3 }
  0x1c   : > { %326 = vsyncadd [#allocation5], 512 }
  0x1d   : > { %4093 = dma.done.wait [#allocation5], 512 }
  0x1e   : > { %4094 = vsyncadd [#allocation5], 4294966784  ;;  %v3968_v4 = vld [vmem:[%s5642_s1] sm:$0xff]   ;;  %v3969_v5 = vld [vmem:[%s5642_s1 + $0x8] sm:$0xff]   ;;  %v4303_v16 = vstv %s4267_s25  ;;  %vm572_vm4 = vcmask 385024   ;;  %v4131_v22 = vmov 0  }
  0x1f   : > { %3848 = vmatprep.subr.bf16.mxu0 %v3968_v4  ;;  %v3970_v6 = vld [vmem:[%s5642_s1 + $0x10] sm:$0xff]   ;;  %v3971_v7 = vld [vmem:[%s5642_s1 + $0x18] sm:$0xff]   ;;  %v3972_v9 = vld [vmem:[%s5642_s1 + $0x20] sm:$0xff]   ;;  %v510_v17 = vadd.s32 2, %v4303_v16  ;;  %v511_v18 = vadd.s32 3, %v4303_v16  ;;  %vm516_vm2 = vcmp.ge.s32.totalorder %v4303_v16, 2 }
  0x20   : > { %3849 = vmatpush3.bf16.msra.mxu0 %v3968_v4  ;;  %v3973_v10 = vld [vmem:[%s5642_s1 + $0x28] sm:$0xff]   ;;  %v3974_v11 = vld [vmem:[%s5642_s1 + $0x30] sm:$0xff]   ;;  %v3975_v12 = vld [vmem:[%s5642_s1 + $0x38] sm:$0xff]   ;;  %vm524_vm3 = vcmp.lt.s32.totalorder %v4303_v16, 10  ;;  %v509_v19 = vadd.s32 1, %v4303_v16  ;;  %v514_v23 = vadd.s32 6, %v4303_v16 }
  0x21   : > { %3850 = vmatprep.subr.bf16.mxu0 %v3969_v5  ;;  %v3976_v8 = vld [vmem:[#allocation2] sm:$0xff]   ;;  %v3977_v13 = vld [vmem:[#allocation2 + $0x8] sm:$0xff]   ;;  %vm518_vm0 = vcmp.ge.s32.totalorder %v510_v17, 2  ;;  %vm526_vm1 = vcmp.lt.s32.totalorder %v510_v17, 10  ;;  %vm519_vm5 = vcmp.ge.s32.totalorder %v511_v18, 2  ;;  %vm527_vm6 = vcmp.lt.s32.totalorder %v511_v18, 10  ;;  %vm532_vm8 = vmand %vm516_vm2, %vm524_vm3 }
  0x22   : > { %3864 = vmatprep.mubr.bf16.mxu0 %v3976_v8  ;;  %v3978_v14 = vld [vmem:[#allocation2 + $0x10] sm:$0xff]   ;;  %v3979_v15 = vld [vmem:[#allocation2 + $0x18] sm:$0xff]   ;;  %v4313_v20 = vld [vmem:[%s5643_s2] ss:$0 sm:$0xff]  ;;  %575 = vst.msk [vmem:[#allocation3 + $0x10] sm:$0x1] %vm572_vm4, %v4131_v22 }
  0x23   : > { %vm4315_vm7 = vmand %vm518_vm0, %vm526_vm1  ;;  %573 = vst.msk [vmem:[#allocation3] sm:$0x1] %vm572_vm4, %v4131_v22  ;;  %vm517_vm10 = vcmp.ge.s32.totalorder %v509_v19, 2  ;;  %vm525_vm11 = vcmp.lt.s32.totalorder %v509_v19, 10  ;;  %vm581_vm12 = vcmask 386049   ;;  %v5669_v30 = vmov 0.0  }
  0x24   : > { %3851 = vmatpush3.bf16.msra.mxu0 %v3969_v5  ;;  %574 = vst.msk [vmem:[#allocation3 + $0x8] sm:$0x1] %vm572_vm4, %v4131_v22  ;;  %576 = vst.msk [vmem:[#allocation3 + $0x18] sm:$0x1] %vm572_vm4, %v4131_v22  ;;  %v3651_v31 = vsel %vm4315_vm7, 1.0, %v5669_v30  ;;  %v3649_v32 = vsel %vm532_vm8, 1.0, %v5669_v30 }
  0x25   : > { %3852 = vmatprep.subr.bf16.mxu0 %v3970_v6  ;;  %577 = vst.msk [vmem:[#allocation3 + $0x20] sm:$0x1] %vm572_vm4, %v4131_v22  ;;  %578 = vst.msk [vmem:[#allocation3 + $0x28] sm:$0x1] %vm572_vm4, %v4131_v22  ;;  %v512_v33 = vadd.s32 4, %v4303_v16  ;;  %vm522_vm13 = vcmp.ge.s32.totalorder %v514_v23, 2 }
  0x26   : > { %579 = vst.msk [vmem:[#allocation3 + $0x30] sm:$0x1] %vm572_vm4, %v4131_v22  ;;  %580 = vst.msk [vmem:[#allocation3 + $0x38] sm:$0x1] %vm572_vm4, %v4131_v22  ;;  %vm530_vm14 = vcmp.lt.s32.totalorder %v514_v23, 10  ;;  %v513_v40 = vadd.s32 5, %v4303_v16 }
  0x27   : > { %vm4349_vm9 = vmand %vm519_vm5, %vm527_vm6  ;;  %584 = vst.msk [vmem:[#allocation3 + $0x14] sm:$0x2] %vm581_vm12, %v4131_v22  ;;  %vm520_vm1 = vcmp.ge.s32.totalorder %v512_v33, 2  ;;  %vm528_vm2 = vcmp.lt.s32.totalorder %v512_v33, 10  ;;  %v515_v50 = vadd.s32 7, %v4303_v16  ;;  %s5655_s21 = smov 96  }
  0x28   : > { %3853 = vmatpush3.bf16.msra.mxu0 %v3970_v6  ;;  %582 = vst.msk [vmem:[#allocation3 + $0x4] sm:$0x2] %vm581_vm12, %v4131_v22  ;;  %583 = vst.msk [vmem:[#allocation3 + $0xc] sm:$0x2] %vm581_vm12, %v4131_v22  ;;  %v3652_v38 = vsel %vm4349_vm9, 1.0, %v5669_v30  ;;  %vm521_vm3 = vcmp.ge.s32.totalorder %v513_v40, 2 }
  0x29   : > { %3854 = vmatprep.subr.bf16.mxu0 %v3971_v7  ;;  %585 = vst.msk [vmem:[#allocation3 + $0x1c] sm:$0x2] %vm581_vm12, %v4131_v22  ;;  %586 = vst.msk [vmem:[#allocation3 + $0x24] sm:$0x2] %vm581_vm12, %v4131_v22  ;;  %vm529_vm6 = vcmp.lt.s32.totalorder %v513_v40, 10  ;;  %vm523_vm8 = vcmp.ge.s32.totalorder %v515_v50, 2 }
  0x2a   : > { %587 = vst.msk [vmem:[#allocation3 + $0x2c] sm:$0x2] %vm581_vm12, %v4131_v22  ;;  %588 = vst.msk [vmem:[#allocation3 + $0x34] sm:$0x2] %vm581_vm12, %v4131_v22  ;;  %vm531_vm9 = vcmp.lt.s32.totalorder %v515_v50, 10  ;;  %s4134_s22 = smov 32  }
  0x2b   : > { %589 = vst.msk [vmem:[#allocation3 + $0x3c] sm:$0x2] %vm581_vm12, %v4131_v22  ;;  %vm533_vm15 = vmand %vm517_vm10, %vm525_vm11  ;;  %vm686_vm11 = vcmask 388097   ;;  %s5657_s13 = smov 16   ;;  %s5653_s15 = smov 112   ;;  %vm1090_vm12 = vcmask 130048  }
  0x2c   : > { %3855 = vmatpush3.bf16.msra.mxu0 %v3971_v7  ;;  %vm538_vm0 = vmand %vm522_vm13, %vm530_vm14  ;;  %v3650_v46 = vsel %vm533_vm15, 1.0, %v5669_v30  ;;  %s5661_s20 = smov 64   ;;  %s5659_s16 = smov 80   ;;  %vm1103_vm13 = vcmask 523264   ;;  %vm1141_vm14 = vcmask 654336   ;;  %vm1116_vm15 = vcmask 916480  }
  0x2d   : > { %3856 = vmatprep.subr.bf16.mxu0 %v3972_v9  ;;  %v3655_v52 = vsel %vm538_vm0, 1.0, %v5669_v30  ;;  %vm536_vm5 = vmand %vm520_vm1, %vm528_vm2  ;;  %s5680_s14 = smov 16   ;;  %s5682_s26 = smov 96   ;;  %vm1064_vm0 = vcmask 392192   ;;  %vm1077_vm1 = vcmask 785408  }
  0x2e   : > { %v3653_v63 = vsel %vm536_vm5, 1.0, %v5669_v30  ;;  %vm537_vm7 = vmand %vm521_vm3, %vm529_vm6  ;;  %s5684_s17 = smov 48  }
  0x2f   : > { %vm539_vm10 = vmand %vm523_vm8, %vm531_vm9 }
  0x30   : > { %3857 = vmatpush3.bf16.msra.mxu0 %v3972_v9  ;;  %v3654_v9 = vsel %vm537_vm7, 1.0, %v5669_v30  ;;  %v3656_v16 = vsel %vm539_vm10, 1.0, %v5669_v30 }
  0x31   : > { %3858 = vmatprep.subr.bf16.mxu0 %v3973_v10 }
  0x34   : > { %3859 = vmatpush3.bf16.msra.mxu0 %v3973_v10 }
  0x35   : > { %3860 = vmatprep.subr.bf16.mxu0 %v3974_v11 }
  0x38   : > { %3861 = vmatpush3.bf16.msra.mxu0 %v3974_v11 }
  0x39   : > { %3862 = vmatprep.subr.bf16.mxu0 %v3975_v12 }
  0x3c   : > { %3863 = vmatpush3.bf16.msra.mxu0 %v3975_v12 }
  0x3d   : > { %2095 = vmatprep.subr.bf16.mxu0 %v4131_v22 }
  0x3f   : > { %3865 = vmatmul.mubr.bf16.vlgmr.msra.gmra.mrb[0].mxu0 %v3977_v13 }
  0x40   : > { %3868 = vmatprep.mubr.bf16.mxu0 %v3978_v14 }
  0x47   : > { %3869 = vmatmul.mubr.bf16.gmra.mrb[4].mxu0 %v3979_v15 }
 0x112   : > { %v4341_v24 = vpop.f32.mrb[0].mxu0 }
 0x113   : > { %v4345_v25 = vadd.f32 %v4341_v24, %v4313_v20  ;;  %v462_v26 = vpop.f32.mrb[1].mxu0 }
 0x114   : > { %v556_v28 = vadd.f32 %v4313_v20, %v462_v26  ;;  %v4354_v29 = vpop.f32.mrb[2].mxu0 }
 0x115   : > { %v5668_v34 = vmax.f32 %v4345_v25, 0.0  ;;  %v4372_v35 = vadd.f32 %v4354_v29, %v4313_v20  ;;  %v4374_v36 = vpop.f32.mrb[3].mxu0 }
 0x116   : > { %v560_v37 = vmax.f32 %v556_v28, 0.0  ;;  %v557_v39 = vadd.f32 %v4313_v20, %v4374_v36 }
 0x117   : > { %v5667_v41 = vmax.f32 %v4372_v35, 0.0  ;;  %v566_v42 = vmul.f32 %v3651_v31, %v5668_v34 }
 0x118   : > { %v561_v43 = vmax.f32 %v557_v39, 0.0  ;;  %v564_v44 = vmul.f32 %v3649_v32, %v560_v37 }
 0x119   : > { %v567_v45 = vmul.f32 %v3652_v38, %v5667_v41  ;;  %v3758_v47 = vpack.c.bf16 %v566_v42, %v566_v42 }
 0x11a   : > { %v3756_v48 = vpack.c.bf16 %v564_v44, %v564_v44  ;;  %v4390_v49 = vpop.f32.mrb[4].mxu0  ;;  %v565_v55 = vmul.f32 %v3650_v46, %v561_v43 }
 0x11b   : > { %v626_v51 = vrot.slane %v3758_v47, 7  ;;  %v558_v53 = vadd.f32 %v4390_v49, %v4313_v20  ;;  %v4396_v54 = vpop.f32.mrb[5].mxu0  ;;  %v3759_v57 = vpack.c.bf16 %v567_v45, %v567_v45 }
 0x11c   : > { %v622_v56 = vrot.slane %v3756_v48, 7  ;;  %v4400_v58 = vadd.f32 %v4313_v20, %v4396_v54  ;;  %v3871_v59 = vpop.f32.mrb[6].mxu0  ;;  %v3757_v4 = vpack.c.bf16 %v565_v55, %v565_v55  ;;  %v3988_v55 = vld [vmem:[%s5645_s4 + $0x80] sm:$0xff]  }
 0x11d   : > { %646 = vrot.lane.b32.xlu1 %v626_v51, %s5655_s21  ;;  %v562_v60 = vmax.f32 %v558_v53, 0.0  ;;  %v4403_v61 = vpop.f32.mrb[7].mxu0  ;;  %v627_v1 = vrot.slane %v626_v51, 4  ;;  %v628_v3 = vrot.slane %v3759_v57, 7  ;;  %v559_v6 = vadd.f32 %v3871_v59, %v4313_v20  ;;  %2096 = vmatpush1.bf16.msra.mxu0 %v3988_v55  ;;  %v4007_v55 = vld [vmem:[%s5645_s4 + $0x28] sm:$0xff]  }
 0x11e   : > { %638 = vrot.lane.b32.xlu0 %v622_v56, %s5655_s21  ;;  %v5666_v62 = vmax.f32 %v4400_v58, 0.0  ;;  %v4410_v0 = vadd.f32 %v4313_v20, %v4403_v61  ;;  %v623_v10 = vrot.slane %v622_v56, 4  ;;  %v624_v11 = vrot.slane %v3757_v4, 7  ;;  %2097 = vmatprep.subr.bf16.mxu0 %v4131_v22 }
 0x11f   : > { %v570_v2 = vmul.f32 %v3655_v52, %v562_v60  ;;  %v563_v12 = vmax.f32 %v559_v6, 0.0  ;;  %v629_v17 = vrot.slane %v628_v3, 4  ;;  %v3990_v6 = vld [vmem:[%s5645_s4 + $0x90] sm:$0xff]  }
 0x120   : > { %v568_v5 = vmul.f32 %v3653_v63, %v5666_v62  ;;  %v5665_v7 = vmax.f32 %v4410_v0, 0.0  ;;  %v625_v18 = vrot.slane %v624_v11, 4  ;;  %v3989_v63 = vld [vmem:[%s5645_s4 + $0x88] sm:$0xff]  }
 0x121   : > { %648 = vrot.lane.b32.xlu1 %v627_v1, %s5655_s21  ;;  %v3762_v8 = vpack.c.bf16 %v570_v2, %v570_v2  ;;  %v571_v19 = vmul.f32 %v3656_v16, %v563_v12  ;;  %2098 = vmatpush1.bf16.msra.mxu0 %v3989_v63  ;;  %v4009_v63 = vld [vmem:[%s5645_s4 + $0x70] sm:$0xff]  }
 0x122   : > { %650 = vrot.lane.b32.xlu0 %v628_v3, %s5655_s21  ;;  %v569_v13 = vmul.f32 %v3654_v9, %v5665_v7  ;;  %v3760_v15 = vpack.c.bf16 %v568_v5, %v568_v5  ;;  %2099 = vmatprep.subr.bf16.mxu0 %v4131_v22 }
 0x123   : > { %v634_v14 = vrot.slane %v3762_v8, 7  ;;  %v3763_v26 = vpack.c.bf16 %v571_v19, %v571_v19  ;;  %v3996_v19 = vld [vmem:[%s5645_s4 + $0xa0] sm:$0xff]  }
 0x124   : > { %v630_v21 = vrot.slane %v3760_v15, 7  ;;  %v3761_v23 = vpack.c.bf16 %v569_v13, %v569_v13  ;;  %v3993_v13 = vld [vmem:[%s5645_s4 + $0x98] sm:$0xff]  }
 0x125   : > { %640 = vrot.lane.b32.xlu1 %v623_v10, %s5655_s21  ;;  %v635_v20 = vrot.slane %v634_v14, 4  ;;  %v636_v32 = vrot.slane %v3763_v26, 7  ;;  %2100 = vmatpush1.bf16.msra.mxu0 %v3990_v6  ;;  %v3991_v10 = vld [vmem:[%s5645_s4 + $0x40] sm:$0xff]   ;;  %v3998_v26 = vld [vmem:[%s5645_s4 + $0x10] sm:$0xff]   ;;  %v4013_v6 = vld [vmem:[%s5645_s4 + $0x38] sm:$0xff]  }
 0x126   : > { %642 = vrot.lane.b32.xlu0 %v624_v11, %s5655_s21  ;;  %v631_v27 = vrot.slane %v630_v21, 4  ;;  %v632_v28 = vrot.slane %v3761_v23, 7  ;;  %2101 = vmatprep.subr.bf16.mxu0 %v4131_v22  ;;  %v3992_v11 = vld [vmem:[%s5645_s4] sm:$0xff]   ;;  %v3997_v23 = vld [vmem:[%s5645_s4 + $0x50] sm:$0xff]  }
 0x127   : > { %v637_v33 = vrot.slane %v636_v32, 4  ;;  %3776 = vmatprep.subr.bf16.mxu1 %v3991_v10 }
 0x128   : > { %v633_v31 = vrot.slane %v632_v28, 4  ;;  %3777 = vmatpush3.bf16.msra.mxu1 %v3992_v11 }
 0x129   : > { %652 = vrot.lane.b32.xlu1 %v629_v17, %s5655_s21  ;;  %2102 = vmatpush1.bf16.msra.mxu0 %v3993_v13  ;;  %v3994_v17 = vld [vmem:[%s5645_s4 + $0x48] sm:$0xff]  }
 0x12a   : > { %644 = vrot.lane.b32.xlu0 %v625_v18, %s5655_s21  ;;  %2103 = vmatprep.subr.bf16.mxu0 %v4131_v22  ;;  %v3995_v18 = vld [vmem:[%s5645_s4 + $0x8] sm:$0xff]  }
 0x12b   : > { %3778 = vmatprep.subr.bf16.mxu1 %v3994_v17 }
 0x12c   : > { %3779 = vmatpush3.bf16.msra.mxu1 %v3995_v18 }
 0x12d   : > { %664 = vrot.lane.b32.xlu1 %v635_v20, %s5655_s21  ;;  %2104 = vmatpush1.bf16.msra.mxu0 %v3996_v19 }
 0x12e   : > { %662 = vrot.lane.b32.xlu0 %v634_v14, %s5655_s21  ;;  %2105 = vmatprep.subr.bf16.mxu0 %v4131_v22 }
 0x12f   : > { %3780 = vmatprep.subr.bf16.mxu1 %v3997_v23 }
 0x130   : > { %3781 = vmatpush3.bf16.msra.mxu1 %v3998_v26 }
 0x131   : > { %656 = vrot.lane.b32.xlu1 %v631_v27, %s5655_s21  ;;  %v3999_v27 = vld [vmem:[%s5645_s4 + $0xa8] sm:$0xff]  }
 0x132   : > { %654 = vrot.lane.b32.xlu0 %v630_v21, %s5655_s21  ;;  %2106 = vmatpush1.bf16.msra.mxu0 %v3999_v27 }
 0x133   : > { %2107 = vmatprep.subr.bf16.mxu0 %v4131_v22 }
 0x135   : > { %660 = vrot.lane.b32.xlu1 %v633_v31, %s5655_s21 }
 0x136   : > { %658 = vrot.lane.b32.xlu0 %v632_v28, %s5655_s21 }
 0x139   : > { %668 = vrot.lane.b32.xlu1 %v637_v33, %s5655_s21 }
 0x13a   : > { %666 = vrot.lane.b32.xlu0 %v636_v32, %s5655_s21 }
 0x18f   : > { %v647_v37 = vpop.permute.xlu1 %646 }
 0x190   : > { %691 = vst.msk [vmem:[#allocation3 + $0x10] sm:$0xe] %vm686_vm11, %v647_v37  ;;  %v639_v38 = vpop.permute.xlu0 %638 }
 0x191   : > { %687 = vst.msk [vmem:[#allocation3] sm:$0xe] %vm686_vm11, %v639_v38  ;;  %v4000_v38 = vld [vmem:[%s5645_s4 + $0x58] sm:$0xff]  }
 0x192   : > { %3782 = vmatprep.subr.bf16.mxu1 %v4000_v38 }
 0x193   : > { %v649_v39 = vpop.permute.xlu1 %648 }
 0x194   : > { %692 = vst.msk [vmem:[#allocation3 + $0x14] sm:$0x1] %vm572_vm4, %v649_v39  ;;  %v651_v40 = vpop.permute.xlu0 %650  ;;  %v4001_v39 = vld [vmem:[%s5645_s4 + $0x18] sm:$0xff]  }
 0x195   : > { %693 = vst.msk [vmem:[#allocation3 + $0x18] sm:$0xe] %vm686_vm11, %v651_v40  ;;  %v4002_v40 = vld [vmem:[%s5645_s4 + $0xb0] sm:$0xff]   ;;  %3783 = vmatpush3.bf16.msra.mxu1 %v4001_v39 }
 0x196   : > { %2108 = vmatpush1.bf16.msra.mxu0 %v4002_v40 }
 0x197   : > { %v641_v42 = vpop.permute.xlu1 %640  ;;  %2109 = vmatprep.subr.bf16.mxu0 %v4131_v22 }
 0x198   : > { %688 = vst.msk [vmem:[#allocation3 + $0x4] sm:$0x1] %vm572_vm4, %v641_v42  ;;  %v643_v43 = vpop.permute.xlu0 %642 }
 0x199   : > { %689 = vst.msk [vmem:[#allocation3 + $0x8] sm:$0xe] %vm686_vm11, %v643_v43  ;;  %v4003_v43 = vld [vmem:[%s5645_s4 + $0x60] sm:$0xff]  }
 0x19a   : > { %3784 = vmatprep.subr.bf16.mxu1 %v4003_v43 }
 0x19b   : > { %v653_v44 = vpop.permute.xlu1 %652  ;;  %v4442_v45 = vld [vmem:[#allocation3 + $0x10] sm:$0x3f]  }
 0x19c   : > { %694 = vst.msk [vmem:[#allocation3 + $0x1c] sm:$0x1] %vm572_vm4, %v653_v44  ;;  %v645_v46 = vpop.permute.xlu0 %644  ;;  %1032 = vrot.lane.b32.xlu0 %v4442_v45, %s4134_s22  ;;  %985 = vrot.lane.b32.xlu1 %v4442_v45, %s5657_s13  ;;  %v4451_v47 = vrot.slane %v4442_v45, 1  ;;  %v923_v3 = vshll.u32 %v4442_v45, 16  ;;  %v921_v12 = vshrl.u32 %v4442_v45, 16 }
 0x19d   : > { %690 = vst.msk [vmem:[#allocation3 + $0xc] sm:$0x1] %vm572_vm4, %v645_v46  ;;  %v4004_v46 = vld [vmem:[%s5645_s4 + $0x20] sm:$0xff]  }
 0x19e   : > { %v925_v9 = vrot.slane %v923_v3, 1  ;;  %3785 = vmatpush3.bf16.msra.mxu1 %v4004_v46  ;;  %v4011_v3 = vld [vmem:[%s5645_s4 + $0xc8] sm:$0xff]  }
 0x19f   : > { %v665_v48 = vpop.permute.xlu1 %664  ;;  %v4470_v57 = vld [vmem:[#allocation3] sm:$0x3f]  }
 0x1a0   : > { %v663_v50 = vpop.permute.xlu0 %662  ;;  %700 = vst.msk [vmem:[#allocation3 + $0x34] sm:$0x1] %vm572_vm4, %v665_v48  ;;  %1017 = vrot.lane.b32.xlu0 %v4451_v47, %s5653_s15  ;;  %v960_v1 = vrot.slane %v4470_v57, 1  ;;  %v926_v14 = vor.u32 %v925_v9, %v921_v12  ;;  %v909_v16 = vshll.u32 %v4470_v57, 16  ;;  %v907_v31 = vshrl.u32 %v4470_v57, 16  ;;  %v4005_v48 = vld [vmem:[%s5645_s4 + $0xb8] sm:$0xff]  }
 0x1a1   : > { %699 = vst.msk [vmem:[#allocation3 + $0x30] sm:$0xe] %vm686_vm11, %v663_v50  ;;  %2110 = vmatpush1.bf16.msra.mxu0 %v4005_v48 }
 0x1a2   : > { %v911_v21 = vrot.slane %v909_v16, 1  ;;  %2111 = vmatprep.subr.bf16.mxu0 %v4131_v22 }
 0x1a3   : > { %v4457_v51 = vld [vmem:[#allocation3 + $0x18] sm:$0x3f]   ;;  %v657_v52 = vpop.permute.xlu1 %656 }
 0x1a4   : > { %v655_v53 = vpop.permute.xlu0 %654  ;;  %696 = vst.msk [vmem:[#allocation3 + $0x24] sm:$0x1] %vm572_vm4, %v657_v52  ;;  %970 = vrot.lane.b32.xlu0 %v4451_v47, %s5655_s21  ;;  %1034 = vrot.lane.b32.xlu1 %v4457_v51, %s4134_s22  ;;  %v4468_v56 = vld [vmem:[#allocation3 + $0x8] sm:$0x3f]   ;;  %v4484_v2 = vrot.slane %v4457_v51, 1  ;;  %v930_v15 = vshll.u32 %v4457_v51, 16  ;;  %v912_v33 = vor.u32 %v911_v21, %v907_v31 }
 0x1a5   : > { %695 = vst.msk [vmem:[#allocation3 + $0x20] sm:$0xe] %vm686_vm11, %v655_v53  ;;  %v961_v8 = vrot.slane %v4468_v56, 1  ;;  %v928_v28 = vshrl.u32 %v4457_v51, 16  ;;  %v916_v37 = vshll.u32 %v4468_v56, 16  ;;  %v914_v44 = vshrl.u32 %v4468_v56, 16 }
 0x1a6   : > { %v932_v20 = vrot.slane %v930_v15, 1  ;;  %v4006_v53 = vld [vmem:[%s5645_s4 + $0x68] sm:$0xff]  }
 0x1a7   : > { %v661_v59 = vpop.permute.xlu1 %660  ;;  %v918_v42 = vrot.slane %v916_v37, 1  ;;  %3786 = vmatprep.subr.bf16.mxu1 %v4006_v53 }
 0x1a8   : > { %v659_v60 = vpop.permute.xlu0 %658  ;;  %698 = vst.msk [vmem:[#allocation3 + $0x2c] sm:$0x1] %vm572_vm4, %v661_v59  ;;  %987 = vrot.lane.b32.xlu0 %v4457_v51, %s5657_s13  ;;  %983 = vrot.lane.b32.xlu1 %v4468_v56, %s5657_s13  ;;  %v933_v32 = vor.u32 %v932_v20, %v928_v28  ;;  %v3984_v52 = vld [vmem:[#allocation3 + $0x30] sm:$0x3f]   ;;  %v4008_v59 = vld [vmem:[%s5645_s4 + $0xc0] sm:$0xff]   ;;  %s5679_s13 = smov 64  }
 0x1a9   : > { %697 = vst.msk [vmem:[#allocation3 + $0x28] sm:$0xe] %vm686_vm11, %v659_v60  ;;  %v919_v50 = vor.u32 %v918_v42, %v914_v44  ;;  %3787 = vmatpush3.bf16.msra.mxu1 %v4007_v55  ;;  %2112 = vmatpush1.bf16.msra.mxu0 %v4008_v59  ;;  %v998_v10 = vshll.u32 %v3984_v52, 16  ;;  %v996_v11 = vshrl.u32 %v3984_v52, 16  ;;  %v4633_v23 = vrot.slane %v3984_v52, 1 }
 0x1aa   : > { %2113 = vmatprep.subr.bf16.mxu0 %v4131_v22  ;;  %3788 = vmatprep.subr.bf16.mxu1 %v4009_v63 }
 0x1ab   : > { %v669_v4 = vpop.permute.xlu1 %668  ;;  %v1000_v12 = vrot.slane %v998_v10, 1 }
 0x1ac   : > { %v667_v5 = vpop.permute.xlu0 %666  ;;  %702 = vst.msk [vmem:[#allocation3 + $0x3c] sm:$0x1] %vm572_vm4, %v669_v4  ;;  %966 = vrot.lane.b32.xlu0 %v960_v1, %s5655_s21  ;;  %972 = vrot.lane.b32.xlu1 %v4484_v2, %s5655_s21  ;;  %v4577_v60 = vld [vmem:[#allocation3 + $0x20] sm:$0x3f]   ;;  %v4010_v1 = vld [vmem:[%s5645_s4 + $0x30] sm:$0xff]   ;;  %vm740_vm4 = vcmask 261120  }
 0x1ad   : > { %701 = vst.msk [vmem:[#allocation3 + $0x38] sm:$0xe] %vm686_vm11, %v667_v5  ;;  %v4593_v4 = vrot.slane %v4577_v60, 1  ;;  %3789 = vmatpush3.bf16.msra.mxu1 %v4010_v1  ;;  %2114 = vmatpush1.bf16.msra.mxu0 %v4011_v3  ;;  %v4012_v5 = vld [vmem:[%s5645_s4 + $0x78] sm:$0xff]   ;;  %v937_v13 = vshll.u32 %v4577_v60, 16  ;;  %v935_v15 = vshrl.u32 %v4577_v60, 16 }
 0x1ae   : > { %2115 = vmatprep.subr.bf16.mxu0 %v4131_v22  ;;  %3790 = vmatprep.subr.bf16.mxu1 %v4012_v5  ;;  %v4140_v3 = vmov 1966171168  }
 0x1af   : > { %v939_v16 = vrot.slane %v937_v13, 1  ;;  %v1177_v5 = vunpack.c.l.s4 %v4140_v3 }
 0x1b0   : > { %1019 = vrot.lane.b32.xlu0 %v4484_v2, %s5653_s15  ;;  %1015 = vrot.lane.b32.xlu1 %v961_v8, %s5653_s15  ;;  %s5663_s15 = smov 48   ;;  %v4609_v9 = vld [vmem:[#allocation3 + $0x28] sm:$0x3f]  }
 0x1b1   : > { %3791 = vmatpush3.bf16.msra.mxu1 %v4013_v6  ;;  %v4616_v22 = vrot.slane %v4609_v9, 1  ;;  %v944_v17 = vshll.u32 %v4609_v9, 16  ;;  %v940_v18 = vor.u32 %v939_v16, %v935_v15  ;;  %v942_v19 = vshrl.u32 %v4609_v9, 16 }
 0x1b2   : > { %v1179_v6 = vlaneseq  ;;  %v1178_v15 = vunpack.c.0.s8 %v1177_v5 }
 0x1b3   : > { %v946_v20 = vrot.slane %v944_v17, 1 }
 0x1b4   : > { %968 = vrot.lane.b32.xlu0 %v961_v8, %s5655_s21  ;;  %1004 = vrot.lane.b32.xlu1 %v926_v14, %s5661_s20  ;;  %v4014_v8 = vld [vmem:[%s5645_s4 + $0xd0] sm:$0xff]   ;;  %v4635_v26 = vld [vmem:[#allocation3 + $0x38] sm:$0x3f]   ;;  %v4666_v16 = vshrl.u32 %v1179_v6, 7 }
 0x1b5   : > { %2116 = vmatpush1.bf16.msra.mxu0 %v4014_v8  ;;  %v947_v21 = vor.u32 %v946_v20, %v942_v19  ;;  %v1047_v27 = vshll.u32 %v4635_v26, 16  ;;  %v1045_v28 = vshrl.u32 %v4635_v26, 16 }
 0x1b6   : > { %vm2361_vm6 = vcmp.ge.s32.totalorder %v4666_v16, 1 }
 0x1b7   : > { %v1049_v31 = vrot.slane %v1047_v27, 1 }
 0x1b8   : > { %952 = vrot.lane.b32.xlu0 %v926_v14, %s5663_s15  ;;  %1051 = vrot.lane.b32.xlu1 %v926_v14, %s5659_s16  ;;  %v1001_v14 = vor.u32 %v1000_v12, %v996_v11 }
 0x1bc   : > { %1053 = vrot.lane.b32.xlu0 %v933_v32, %s5659_s16  ;;  %948 = vrot.lane.b32.xlu1 %v912_v33, %s5663_s15 }
 0x1c0   : > { %1006 = vrot.lane.b32.xlu0 %v933_v32, %s5661_s20  ;;  %954 = vrot.lane.b32.xlu1 %v933_v32, %s5663_s15  ;;  %s5681_s20 = smov 112   ;;  %v1050_v32 = vor.u32 %v1049_v31, %v1045_v28 }
 0x1c4   : > { %950 = vrot.lane.b32.xlu0 %v919_v50, %s5663_s15  ;;  %1040 = vrot.lane.b32.xlu1 %v3984_v52, %s4134_s22  ;;  %s5683_s15 = smov 80  }
 0x1c8   : > { %1002 = vrot.lane.b32.xlu0 %v919_v50, %s5679_s13  ;;  %989 = vrot.lane.b32.xlu1 %v4577_v60, %s5680_s14 }
 0x1cc   : > { %1036 = vrot.lane.b32.xlu0 %v4577_v60, %s4134_s22  ;;  %1021 = vrot.lane.b32.xlu1 %v4593_v4, %s5681_s20 }
 0x1d0   : > { %974 = vrot.lane.b32.xlu0 %v4593_v4, %s5682_s26  ;;  %1038 = vrot.lane.b32.xlu1 %v4609_v9, %s4134_s22 }
 0x1d4   : > { %991 = vrot.lane.b32.xlu1 %v4609_v9, %s5680_s14  ;;  %1023 = vrot.lane.b32.xlu0 %v4616_v22, %s5681_s20 }
 0x1d8   : > { %976 = vrot.lane.b32.xlu1 %v4616_v22, %s5682_s26  ;;  %1059 = vrot.lane.b32.xlu0 %v1001_v14, %s5683_s15 }
 0x1dc   : > { %1008 = vrot.lane.b32.xlu1 %v940_v18, %s5679_s13  ;;  %1055 = vrot.lane.b32.xlu0 %v940_v18, %s5683_s15 }
 0x1e0   : > { %993 = vrot.lane.b32.xlu0 %v3984_v52, %s5680_s14  ;;  %1057 = vrot.lane.b32.xlu1 %v947_v21, %s5683_s15  ;;  %s3709_s14 = sadd.s32 4294967295, %s4267_s25 }
 0x1e4   : > { %956 = vrot.lane.b32.xlu0 %v940_v18, %s5684_s17  ;;  %1025 = vrot.lane.b32.xlu1 %v4633_v23, %s5681_s20  ;;  %s5722_s20 = sand.u32 1, %s4105_s28  }
 0x1e5   : > { %s5589_s16 = scalar_lea.sflag [#allocation7], %s5722_s20 }
 0x1e8   : > { %1012 = vrot.lane.b32.xlu0 %v1001_v14, %s5679_s13  ;;  %1010 = vrot.lane.b32.xlu1 %v947_v21, %s5679_s13 }
 0x1ec   : > { %958 = vrot.lane.b32.xlu1 %v947_v21, %s5684_s17  ;;  %1042 = vrot.lane.b32.xlu0 %v4635_v26, %s4134_s22 }
 0x1f0   : > { %1061 = vrot.lane.b32.xlu1 %v1050_v32, %s5683_s15  ;;  %v4678_v32 = vsub.s32 %v1178_v15, %v4666_v16 }
 0x20e   : > { %v1033_v33 = vpop.permute.xlu0 %1032  ;;  %v986_v37 = vpop.permute.xlu1 %985 }
 0x212   : > { %v1018_v38 = vpop.permute.xlu0 %1017 }
 0x216   : > { %v4648_v39 = vpop.permute.xlu0 %970  ;;  %v1035_v40 = vpop.permute.xlu1 %1034 }
 0x217   : > { %v1132_v12 = vsel %vm740_vm4, %v1018_v38, %v1035_v40 }
 0x21a   : > { %v4650_v42 = vpop.permute.xlu0 %987  ;;  %v984_v43 = vpop.permute.xlu1 %983 }
 0x21e   : > { %v967_v44 = vpop.permute.xlu0 %966  ;;  %v4652_v46 = vpop.permute.xlu1 %972 }
 0x222   : > { %v4654_v48 = vpop.permute.xlu0 %1019  ;;  %v1016_v50 = vpop.permute.xlu1 %1015 }
 0x223   : > { %v1130_v19 = vsel %vm740_vm4, %v1016_v50, %v1033_v33  ;;  %v1092_v33 = vsel %vm1090_vm12, %v967_v44, %v984_v43 }
 0x226   : > { %v969_v52 = vpop.permute.xlu0 %968  ;;  %v1005_v53 = vpop.permute.xlu1 %1004 }
 0x227   : > { %v1094_v8 = vsel %vm1090_vm12, %v969_v52, %v986_v37 }
 0x228   : > { %v1107_v14 = vsel %vm1103_vm13, %v1094_v8, %v1005_v53 }
 0x229   : > { %v1120_v27 = vsel %vm1116_vm15, %v1107_v14, %v1018_v38 }
 0x22a   : > { %v4656_v55 = vpop.permute.xlu0 %952  ;;  %v1052_v59 = vpop.permute.xlu1 %1051 }
 0x22b   : > { %v1143_v28 = vsel %vm1141_vm14, %v1130_v19, %v1052_v59 }
 0x22c   : > { %v1175_v3 = vcombine.high %v1143_v28, %v4451_v47 }
 0x22e   : > { %v1054_v63 = vpop.permute.xlu0 %1053  ;;  %v949_v1 = vpop.permute.xlu1 %948 }
 0x22f   : > { %v1145_v13 = vsel %vm1141_vm14, %v1132_v12, %v1054_v63  ;;  %v1066_v37 = vsel %vm1064_vm0, %v4470_v57, %v949_v1 }
 0x230   : > { %v1232_v20 = vcombine.low %v1145_v13, %v4484_v2  ;;  %v1079_v5 = vsel %vm1077_vm1, %v1066_v37, %v967_v44  ;;  %v1233_v37 = vcombine.high %v1145_v13, %v4484_v2  ;;  %v1096_v2 = vsel %vm1090_vm12, %v4648_v39, %v4650_v42 }
 0x231   : > { %v1070_v42 = vsel %vm1064_vm0, %v4442_v45, %v4656_v55 }
 0x232   : > { %v4659_v10 = vpop.permute.xlu0 %1006  ;;  %v4661_v11 = vpop.permute.xlu1 %954  ;;  %v1254_v38 = vrot.slane %v1232_v20, %v4678_v32  ;;  %v1203_v20 = vrot.slane %v1175_v3, %v4678_v32  ;;  %v1261_v13 = vrot.slane %v1233_v37, %v4678_v32  ;;  %v1083_v45 = vsel %vm1077_vm1, %v1070_v42, %v4648_v39 }
 0x236   : > { %v951_v17 = vpop.permute.xlu0 %950  ;;  %v4668_v18 = vpop.permute.xlu1 %1040 }
 0x237   : > { %v1068_v21 = vsel %vm1064_vm0, %v4468_v56, %v951_v17  ;;  %v1174_v56 = vcombine.low %v1143_v28, %v4451_v47 }
 0x238   : > { %v1081_v31 = vsel %vm1077_vm1, %v1068_v21, %v969_v52 }
 0x239   : > { %v1230_v40 = vcombine.low %v1081_v31, %v1120_v27  ;;  %v1196_v15 = vrot.slane %v1174_v56, %v4678_v32  ;;  %v1231_v47 = vcombine.high %v1081_v31, %v1120_v27 }
 0x23a   : > { %v1003_v53 = vpop.permute.xlu0 %1002  ;;  %v4683_v63 = vpop.permute.xlu1 %989 }
 0x23b   : > { %v1240_v59 = vrot.slane %v1230_v40, %v4678_v32  ;;  %v1105_v52 = vsel %vm1103_vm13, %v1092_v33, %v1003_v53 }
 0x23c   : > { %v1118_v57 = vsel %vm1116_vm15, %v1105_v52, %v1016_v50  ;;  %v1247_v52 = vrot.slane %v1231_v47, %v4678_v32 }
 0x23d   : > { %v1262_v1 = vcombine.low %v1240_v59, %v1254_v38  ;;  %v1172_v6 = vcombine.low %v1079_v5, %v1118_v57  ;;  %v1263_v43 = vcombine.high %v1240_v59, %v1254_v38  ;;  %v1173_v8 = vcombine.high %v1079_v5, %v1118_v57 }
 0x23e   : > { %v1037_v12 = vpop.permute.xlu0 %1036  ;;  %v4692_v14 = vpop.permute.xlu1 %1021 }
 0x23f   : > { %v1182_v17 = vrot.slane %v1172_v6, %v4678_v32  ;;  %v1271_v19 = vrot.slane %v1262_v1, %v4678_v32  ;;  %v1189_v44 = vrot.slane %v1173_v8, %v4678_v32  ;;  %v1285_v56 = vrot.slane %v1263_v43, %v4678_v32 }
 0x240   : > { %v1109_v43 = vsel %vm1103_vm13, %v1096_v2, %v4659_v10 }
 0x241   : > { %v1204_v21 = vcombine.low %v1182_v17, %v1196_v15  ;;  %v1205_v50 = vcombine.high %v1182_v17, %v1196_v15  ;;  %v1286_v28 = vcombine.high %v1271_v19, %v1271_v19  ;;  %v1206_v40 = vcombine.low %v1189_v44, %v1203_v20 }
 0x242   : > { %v4700_v33 = vpop.permute.xlu0 %974  ;;  %v1039_v53 = vpop.permute.xlu1 %1038  ;;  %v1264_v17 = vcombine.low %v1247_v52, %v1261_v13  ;;  %v1122_v10 = vsel %vm1116_vm15, %v1109_v43, %v4654_v48  ;;  %v1287_v37 = vcombine.high %v1285_v56, %v1285_v56 }
 0x243   : > { %v1213_v38 = vrot.slane %v1204_v21, %v4678_v32  ;;  %v1227_v59 = vrot.slane %v1205_v50, %v4678_v32  ;;  %v1220_v27 = vrot.slane %v1206_v40, %v4678_v32  ;;  %v1584_v31 = vcombine.low %v1285_v56, %v1286_v28 }
 0x245   : > { %v1581_v3 = vcombine.low %v1213_v38, %v1227_v59  ;;  %v3675_v5 = vcombine.high %v1213_v38, %v1227_v59  ;;  %v1583_v6 = vcombine.low %v1220_v27, %v1271_v19  ;;  %v1612_v47 = vrot.slane %v1584_v31, %v4678_v32 }
 0x246   : > { %v4711_v57 = vpop.permute.xlu0 %1023  ;;  %v4713_v1 = vpop.permute.xlu1 %991  ;;  %v1072_v19 = vsel %vm1064_vm0, %v4457_v51, %v4661_v11  ;;  %v1278_v51 = vrot.slane %v1264_v17, %v4678_v32  ;;  %v1288_v27 = vcombine.low %v1083_v45, %v1122_v10  ;;  %v1289_v31 = vcombine.high %v1083_v45, %v1122_v10 }
 0x247   : > { %v1591_v8 = vrot.slane %v1581_v3, %v4678_v32  ;;  %v1598_v15 = vrot.slane %v3675_v5, %v4678_v32  ;;  %v1605_v20 = vrot.slane %v1583_v6, %v4678_v32  ;;  %v1085_v56 = vsel %vm1077_vm1, %v1072_v19, %v4652_v46 }
 0x248   : > { %v1098_v3 = vsel %vm1090_vm12, %v4652_v46, %v4683_v63  ;;  %v1134_v5 = vsel %vm740_vm4, %v4654_v48, %v1037_v12  ;;  %v1649_v43 = vcombine.low %v1287_v37, %v1278_v51  ;;  %v1298_v48 = vrot.slane %v1288_v27, %v4678_v32 }
 0x249   : > { %v1614_v44 = vcombine.high %v1591_v8, %v1598_v15  ;;  %v1613_v21 = vcombine.low %v1591_v8, %v1598_v15  ;;  %v1616_v40 = vcombine.high %v1605_v20, %v1612_v47  ;;  %v1615_v38 = vcombine.low %v1605_v20, %v1612_v47 }
 0x24a   : > { %v1060_v50 = vpop.permute.xlu0 %1059  ;;  %v4729_v28 = vpop.permute.xlu1 %976  ;;  %v1138_v63 = vsel %vm740_vm4, %v4711_v57, %v4668_v18  ;;  %v1136_v19 = vsel %vm740_vm4, %v4692_v14, %v1039_v53  ;;  %v1063_v18 = vrot.slane %v4635_v26, 1 }
 0x24b   : > { %v1630_v59 = vrot.slane %v1614_v44, %v4678_v32  ;;  %v1623_v52 = vrot.slane %v1613_v21, %v4678_v32  ;;  %v1644_v55 = vrot.slane %v1616_v40, %v4678_v32  ;;  %v1637_v11 = vrot.slane %v1615_v38, %v4678_v32 }
 0x24c   : > { %v1305_v40 = vrot.slane %v1289_v31, %v4678_v32 }
 0x24d   : > { %v1647_v13 = vcombine.low %v1630_v59, %v1644_v55  ;;  %v1648_v6 = vcombine.high %v1630_v59, %v1644_v55  ;;  %v1645_v17 = vcombine.low %v1623_v52, %v1637_v11  ;;  %v1646_v20 = vcombine.high %v1623_v52, %v1637_v11 }
 0x24e   : > { %v1056_v2 = vpop.permute.xlu0 %1055  ;;  %v1009_v39 = vpop.permute.xlu1 %1008 }
 0x24f   : > { %v1147_v8 = vsel %vm1141_vm14, %v1134_v5, %v1056_v2  ;;  %v1111_v15 = vsel %vm1103_vm13, %v1098_v3, %v1009_v39  ;;  %2062 = vmatprep.mubr.bf16.mxu1 %v1647_v13  ;;  %3705 = vmatprep.mubr.msk.bf16.mxu0 %vm1064_vm0, %v1648_v6  ;;  %v1100_v39 = vsel %vm1090_vm12, %v4700_v33, %v4713_v1 }
 0x250   : > { %v1290_v47 = vcombine.low %v1147_v8, %v4593_v4  ;;  %v1291_v42 = vcombine.high %v1147_v8, %v4593_v4  ;;  %v1124_v46 = vsel %vm1116_vm15, %v1111_v15, %v4692_v14  ;;  %2063 = vmatmul.mubr.bf16.vlgmr.msra.gmra.mrb[0].mxu1 %v1645_v17  ;;  %2128 = vmatmul.mubr.bf16.vlgmr.msra.gmra.mrb[8].mxu0 %v1646_v20 }
 0x251   : > { %v1346_v12 = vcombine.low %v1085_v56, %v1124_v46  ;;  %v1151_v4 = vsel %vm1141_vm14, %v1138_v63, %v1060_v50  ;;  %v1347_v38 = vcombine.high %v1085_v56, %v1124_v46  ;;  %v1659_v14 = vrot.slane %v1649_v43, %v4678_v32 }
 0x252   : > { %v1312_v44 = vrot.slane %v1290_v47, %v4678_v32  ;;  %v1319_v21 = vrot.slane %v1291_v42, %v4678_v32  ;;  %v994_v10 = vpop.permute.xlu0 %993  ;;  %v1058_v37 = vpop.permute.xlu1 %1057  ;;  %v1406_v53 = vcombine.low %v1151_v4, %v4633_v23  ;;  %v1407_v50 = vcombine.high %v1151_v4, %v4633_v23 }
 0x253   : > { %v1149_v59 = vsel %vm1141_vm14, %v1136_v19, %v1058_v37  ;;  %v1356_v55 = vrot.slane %v1346_v12, %v4678_v32  ;;  %v1363_v13 = vrot.slane %v1347_v38, %v4678_v32  ;;  %v1102_v47 = vsel %vm1090_vm12, %v4729_v28, %v994_v10 }
 0x254   : > { %v1320_v52 = vcombine.low %v1298_v48, %v1312_v44  ;;  %v1321_v45 = vcombine.high %v1298_v48, %v1312_v44  ;;  %v1348_v51 = vcombine.low %v1149_v59, %v4616_v22  ;;  %v1349_v11 = vcombine.high %v1149_v59, %v4616_v22 }
 0x255   : > { %v1322_v27 = vcombine.low %v1305_v40, %v1319_v21  ;;  %v1428_v17 = vrot.slane %v1406_v53, %v4678_v32  ;;  %v1435_v20 = vrot.slane %v1407_v50, %v4678_v32 }
 0x256   : > { %v1329_v31 = vrot.slane %v1320_v52, %v4678_v32  ;;  %v1343_v56 = vrot.slane %v1321_v45, %v4678_v32  ;;  %v1370_v3 = vrot.slane %v1348_v51, %v4678_v32  ;;  %v957_v5 = vpop.permute.xlu0 %956  ;;  %v1026_v2 = vpop.permute.xlu1 %1025  ;;  %v1377_v23 = vrot.slane %v1349_v11, %v4678_v32 }
 0x257   : > { %v1074_v22 = vsel %vm1064_vm0, %v4577_v60, %v957_v5  ;;  %v1336_v1 = vrot.slane %v1322_v27, %v4678_v32 }
 0x258   : > { %v1650_v6 = vcombine.low %v1329_v31, %v1343_v56  ;;  %v3676_v43 = vcombine.high %v1329_v31, %v1343_v56  ;;  %v1378_v8 = vcombine.low %v1356_v55, %v1370_v3  ;;  %v1379_v15 = vcombine.high %v1356_v55, %v1370_v3 }
 0x259   : > { %v1380_v42 = vcombine.low %v1363_v13, %v1377_v23  ;;  %v1087_v19 = vsel %vm1077_vm1, %v1074_v22, %v4700_v33 }
 0x25a   : > { %v1387_v46 = vrot.slane %v1378_v8, %v4678_v32  ;;  %v1401_v48 = vrot.slane %v1379_v15, %v4678_v32  ;;  %v1013_v63 = vpop.permute.xlu0 %1012  ;;  %v1011_v60 = vpop.permute.xlu1 %1010  ;;  %v1666_v12 = vrot.slane %v1650_v6, %v4678_v32  ;;  %v1673_v21 = vrot.slane %v3676_v43, %v4678_v32 }
 0x25b   : > { %v1115_v4 = vsel %vm1103_vm13, %v1102_v47, %v1013_v63  ;;  %v1113_v44 = vsel %vm1103_vm13, %v1100_v39, %v1011_v60  ;;  %v1394_v10 = vrot.slane %v1380_v42, %v4678_v32 }
 0x25c   : > { %v1402_v37 = vcombine.high %v1387_v46, %v1387_v46  ;;  %v1403_v40 = vcombine.high %v1401_v48, %v1401_v48  ;;  %v1652_v38 = vcombine.low %v1336_v1, %v1387_v46  ;;  %v1128_v59 = vsel %vm1116_vm15, %v1115_v4, %v1026_v2 }
 0x25d   : > { %v1126_v52 = vsel %vm1116_vm15, %v1113_v44, %v4711_v57  ;;  %v1682_v45 = vcombine.high %v1659_v14, %v1666_v12  ;;  %v1681_v51 = vcombine.low %v1659_v14, %v1666_v12 }
 0x25e   : > { %v1717_v53 = vcombine.low %v1401_v48, %v1402_v37  ;;  %v1718_v33 = vcombine.low %v1403_v40, %v1394_v10  ;;  %v1404_v50 = vcombine.low %v1087_v19, %v1126_v52  ;;  %v1405_v55 = vcombine.high %v1087_v19, %v1126_v52  ;;  %v1043_v11 = vpop.permute.xlu0 %1042  ;;  %v959_v27 = vpop.permute.xlu1 %958 }
 0x25f   : > { %v1140_v31 = vsel %vm740_vm4, %v1026_v2, %v1043_v11  ;;  %v1076_v56 = vsel %vm1064_vm0, %v4609_v9, %v959_v27  ;;  %v1680_v3 = vrot.slane %v1652_v38, %v4678_v32  ;;  %v1698_v5 = vrot.slane %v1682_v45, %v4678_v32 }
 0x260   : > { %v1414_v39 = vrot.slane %v1404_v50, %v4678_v32  ;;  %v1421_v57 = vrot.slane %v1405_v55, %v4678_v32  ;;  %v1089_v14 = vsel %vm1077_vm1, %v1076_v56, %v4729_v28  ;;  %v1691_v13 = vrot.slane %v1681_v51, %v4678_v32 }
 0x261   : > { %v1462_v23 = vcombine.low %v1089_v14, %v1128_v59  ;;  %v1463_v22 = vcombine.high %v1089_v14, %v1128_v59  ;;  %v1684_v6 = vcombine.high %v1673_v21, %v1680_v3  ;;  %v1683_v2 = vcombine.low %v1673_v21, %v1680_v3 }
 0x262   : > { %v1436_v43 = vcombine.low %v1414_v39, %v1428_v17  ;;  %v1437_v8 = vcombine.high %v1414_v39, %v1428_v17  ;;  %v1438_v9 = vcombine.low %v1421_v57, %v1435_v20  ;;  %v1062_v15 = vpop.permute.xlu1 %1061  ;;  %v1727_v47 = vrot.slane %v1717_v53, %v4678_v32 }
 0x263   : > { %v1472_v42 = vrot.slane %v1462_v23, %v4678_v32  ;;  %v1479_v1 = vrot.slane %v1463_v22, %v4678_v32  ;;  %v1153_v46 = vsel %vm1141_vm14, %v1140_v31, %v1062_v15  ;;  %v1712_v28 = vrot.slane %v1684_v6, %v4678_v32 }
 0x264   : > { %v1445_v48 = vrot.slane %v1436_v43, %v4678_v32  ;;  %v1452_v63 = vrot.slane %v1438_v9, %v4678_v32  ;;  %v1459_v60 = vrot.slane %v1437_v8, %v4678_v32  ;;  %v1464_v17 = vcombine.low %v1153_v46, %v1063_v18 }
 0x265   : > { %v1465_v20 = vcombine.high %v1153_v46, %v1063_v18  ;;  %v1715_v12 = vcombine.low %v1698_v5, %v1712_v28  ;;  %v1716_v19 = vcombine.high %v1698_v5, %v1712_v28  ;;  %v1705_v4 = vrot.slane %v1683_v2, %v4678_v32 }
 0x266   : > { %v1486_v44 = vrot.slane %v1464_v17, %v4678_v32  ;;  %v1719_v21 = vcombine.low %v1445_v48, %v1459_v60  ;;  %v3677_v10 = vcombine.high %v1445_v48, %v1459_v60  ;;  %v1734_v37 = vrot.slane %v1718_v33, %v4678_v32 }
 0x267   : > { %v1493_v40 = vrot.slane %v1465_v20, %v4678_v32  ;;  %2070 = vmatprep.mubr.bf16.mxu1 %v1715_v12  ;;  %3706 = vmatprep.mubr.msk.bf16.mxu0 %vm1064_vm0, %v1716_v19  ;;  %v1713_v38 = vcombine.low %v1691_v13, %v1705_v4  ;;  %v1714_v59 = vcombine.high %v1691_v13, %v1705_v4  ;;  %v4843_v4 = vstv %s3709_s14 }
 0x268   : > { %v1494_v52 = vcombine.low %v1472_v42, %v1486_v44  ;;  %v1495_v26 = vcombine.high %v1472_v42, %v1486_v44  ;;  %v1741_v18 = vrot.slane %v1719_v21, %v4678_v32  ;;  %v1748_v45 = vrot.slane %v3677_v10, %v4678_v32 }
 0x269   : > { %v1496_v51 = vcombine.low %v1479_v1, %v1493_v40  ;;  %2071 = vmatmul.mubr.bf16.gmra.mrb[4].mxu1 %v1713_v38  ;;  %2136 = vmatmul.mubr.bf16.gmra.mrb[12].mxu0 %v1714_v59  ;;  %v1750_v53 = vcombine.high %v1727_v47, %v1734_v37  ;;  %v1749_v50 = vcombine.low %v1727_v47, %v1734_v37  ;;  %v4141_v44 = vmov 1983009808  }
 0x26a   : > { %v1503_v33 = vrot.slane %v1494_v52, %v4678_v32  ;;  %v1517_v55 = vrot.slane %v1495_v26, %v4678_v32  ;;  %v1752_v11 = vcombine.high %v1741_v18, %v1748_v45  ;;  %v1751_v27 = vcombine.low %v1741_v18, %v1748_v45 }
 0x26b   : > { %v1510_v31 = vrot.slane %v1496_v51, %v4678_v32  ;;  %v1766_v56 = vrot.slane %v1750_v53, %v4678_v32  ;;  %v1759_v14 = vrot.slane %v1749_v50, %v4678_v32  ;;  %v2178_v21 = vunpack.c.l.s4 %v4141_v44  ;;  %v4858_v50 = vld [vmem:[%s5646_s5] ss:$0 sm:$0xff] }
 0x26c   : > { %v1518_v3 = vcombine.high %v1503_v33, %v1503_v33  ;;  %v1519_v5 = vcombine.high %v1517_v55, %v1517_v55  ;;  %v1785_v39 = vcombine.low %v1452_v63, %v1503_v33  ;;  %v1780_v57 = vrot.slane %v1752_v11, %v4678_v32 }
 0x26d   : > { %v1773_v13 = vrot.slane %v1751_v27, %v4678_v32  ;;  %vm2343_vm2 = vcmp.ge.s32.totalorder %v4843_v4, 0  ;;  %vm2349_vm3 = vcmp.lt.s32.totalorder %v4843_v4, 8  ;;  %v4142_v10 = vmov 269488144  }
 0x26e   : > { %v1786_v23 = vcombine.low %v1517_v55, %v1518_v3  ;;  %v1787_v22 = vcombine.low %v1519_v5, %v1510_v31  ;;  %v1783_v6 = vcombine.low %v1766_v56, %v1780_v57  ;;  %v1784_v2 = vcombine.high %v1766_v56, %v1780_v57  ;;  %vm4850_vm5 = vmand %vm2343_vm2, %vm2349_vm3 }
 0x26f   : > { %v1781_v43 = vcombine.low %v1759_v14, %v1773_v13  ;;  %v1782_v8 = vcombine.high %v1759_v14, %v1773_v13  ;;  %v1794_v9 = vrot.slane %v1785_v39, %v4678_v32  ;;  %v4143_v37 = vmov 842150450   ;;  %vm2379_vm7 = vmand %vm4850_vm5, %vm2361_vm6 }
 0x270   : > { %2078 = vmatprep.mubr.bf16.mxu1 %v1783_v6  ;;  %3707 = vmatprep.mubr.msk.bf16.mxu0 %vm1064_vm0, %v1784_v2  ;;  %v1801_v15 = vrot.slane %v1786_v23, %v4678_v32  ;;  %v1808_v47 = vrot.slane %v1787_v22, %v4678_v32  ;;  %v2453_v40 = vunpack.c.l.s4 %v4143_v37  ;;  %v4144_v38 = vmov 1414812756  }
 0x271   : > { %2079 = vmatmul.mubr.bf16.gmra.mrb[8].mxu1 %v1781_v43  ;;  %2144 = vmatmul.mubr.bf16.gmra.mrb[16].mxu0 %v1782_v8  ;;  %v2460_v59 = vunpack.c.l.s4 %v4144_v38  ;;  %v4145_v52 = vmov 1987475062   ;;  %v4848_v18 = vadd.s32 8, %v4666_v16  ;;  %v2179_v55 = vunpack.c.0.s8 %v2178_v21 }
 0x272   : > { %v1810_v42 = vcombine.high %v1794_v9, %v1801_v15  ;;  %v1811_v1 = vcombine.high %v1808_v47, %v1808_v47  ;;  %v1809_v46 = vcombine.low %v1794_v9, %v1801_v15  ;;  %v1832_v60 = vrot.slane %v1808_v47, %v4678_v32 }
 0x273   : > { %v2467_v26 = vunpack.c.l.s4 %v4145_v52  ;;  %v2454_v56 = vunpack.c.0.s8 %v2453_v40  ;;  %v2461_v39 = vunpack.c.0.s8 %v2460_v59  ;;  %vm2392_vm8 = vcmp.le.s32.totalorder %v4848_v18, 8 }
 0x274   : > { %v1825_v28 = vrot.slane %v1810_v42, %v4678_v32  ;;  %v1839_v48 = vrot.slane %v1811_v1, %v4678_v32  ;;  %v1818_v63 = vrot.slane %v1809_v46, %v4678_v32  ;;  %v2446_v32 = vunpack.c.l.s4 %v4142_v10  ;;  %vm2398_vm9 = vmand %vm4850_vm5, %vm2392_vm8 }
 0x275   : > { %v2468_v57 = vunpack.c.0.s8 %v2467_v26  ;;  %v4867_v6 = vsub.s32 %v2179_v55, %v4666_v16  ;;  %v2338_v43 = vadd.s32 1, %v4843_v4  ;;  %v3710_v9 = vsel %vm2379_vm7, 1.0, %v5669_v30 }
 0x276   : > { %v1842_v17 = vcombine.low %v1825_v28, %v1839_v48  ;;  %v1843_v20 = vcombine.high %v1825_v28, %v1839_v48  ;;  %v1840_v12 = vcombine.low %v1818_v63, %v1832_v60  ;;  %v1841_v19 = vcombine.high %v1818_v63, %v1832_v60 }
 0x277   : > { %v2447_v11 = vunpack.c.0.s8 %v2446_v32  ;;  %v4875_v15 = vsub.s32 %v2454_v56, %v4666_v16  ;;  %v4883_v42 = vsub.s32 %v2461_v39, %v4666_v16  ;;  %v4886_v1 = vsub.s32 %v2468_v57, %v4666_v16 }
 0x278   : > { %2086 = vmatprep.mubr.bf16.mxu1 %v1842_v17  ;;  %3708 = vmatprep.mubr.msk.bf16.mxu0 %vm1064_vm0, %v1843_v20  ;;  %v2339_v46 = vadd.s32 2, %v4843_v4  ;;  %vm2344_vm10 = vcmp.ge.s32.totalorder %v2338_v43, 0  ;;  %v3711_v60 = vsel %vm2398_vm9, 1.0, %v5669_v30  ;;  %vm2350_vm11 = vcmp.lt.s32.totalorder %v2338_v43, 8 }
 0x279   : > { %2087 = vmatmul.mubr.bf16.gmra.mrb[12].mxu1 %v1840_v12  ;;  %2152 = vmatmul.mubr.bf16.gmra.mrb[20].mxu0 %v1841_v19  ;;  %v4870_v2 = vsub.s32 %v2447_v11, %v4666_v16  ;;  %v2458_v12 = vrot.slane %v3710_v9, %v4875_v15  ;;  %v2465_v44 = vrot.slane %v3710_v9, %v4883_v42  ;;  %v2340_v59 = vadd.s32 3, %v4843_v4  ;;  %vm2356_vm15 = vmand %vm2344_vm10, %vm2350_vm11 }
 0x27a   : > { %v2472_v21 = vrot.slane %v3710_v9, %v4886_v1  ;;  %vm2345_vm12 = vcmp.ge.s32.totalorder %v2339_v46, 0  ;;  %vm2351_vm14 = vcmp.lt.s32.totalorder %v2339_v46, 8  ;;  %v2341_v55 = vadd.s32 4, %v4843_v4  ;;  %vm4912_vm2 = vmand %vm2356_vm15, %vm2361_vm6 }
 0x27b   : > { %v2451_v63 = vrot.slane %v3710_v9, %v4870_v2  ;;  %v2479_v38 = vrot.slane %v3711_v60, %v4870_v2  ;;  %vm4905_vm0 = vmand %vm2345_vm12, %vm2351_vm14  ;;  %vm2346_vm3 = vcmp.ge.s32.totalorder %v2340_v59, 0  ;;  %vm2352_vm5 = vcmp.lt.s32.totalorder %v2340_v59, 8 }
 0x27c   : > { %vm2383_vm7 = vmand %vm4905_vm0, %vm2361_vm6  ;;  %vm2347_vm10 = vcmp.ge.s32.totalorder %v2341_v55, 0  ;;  %vm2353_vm11 = vcmp.lt.s32.totalorder %v2341_v55, 8 }
 0x27d   : > { %vm4924_vm9 = vmand %vm2356_vm15, %vm2392_vm8 }
 0x27e   : > { %vm4934_vm12 = vmand %vm2346_vm3, %vm2352_vm5 }
 0x27f   : > { %vm2402_vm14 = vmand %vm4905_vm0, %vm2392_vm8 }
 0x280   : > { %vm4951_vm15 = vmand %vm2347_vm10, %vm2353_vm11 }
 0x281   : > { %vm4979_vm5 = vmand %vm4934_vm12, %vm2392_vm8 }
 0x282   : > { %vm2406_vm10 = vmand %vm4951_vm15, %vm2392_vm8 }
 0x323   : > { %v3792_v45 = vpop.f32.mrb[0].mxu1  ;;  %v2129_v51 = vpop.f32.mrb[8].mxu0 }
 0x324   : > { %v3793_v33 = vpop.f32.mrb[1].mxu1  ;;  %v2131_v27 = vpop.f32.mrb[9].mxu0 }
 0x325   : > { %v3794_v31 = vadd.f32 %v3793_v33, %v3792_v45  ;;  %v3795_v3 = vpop.f32.mrb[2].mxu1  ;;  %v2132_v5 = vpop.f32.mrb[10].mxu0 }
 0x326   : > { %v3796_v14 = vpop.f32.mrb[3].mxu1  ;;  %v2134_v13 = vpop.f32.mrb[11].mxu0 }
 0x327   : > { %v2065_v23 = vadd.f32 %v3794_v31, %v4858_v50  ;;  %v3797_v22 = vadd.f32 %v3796_v14, %v3795_v3  ;;  %v2342_v14 = vadd.s32 5, %v4843_v4  ;;  %v4948_v4 = vsel %vm2383_vm7, 1.0, %v5669_v30  ;;  %vm4995_vm7 = vmand %vm4951_vm15, %vm2361_vm6 }
 0x328   : > { %v2535_v33 = vrot.slane %v4948_v4, %v4883_v42  ;;  %v2542_v56 = vrot.slane %v4948_v4, %v4886_v1 }
 0x329   : > { %v2130_v8 = vadd.f32 %v2129_v51, %v2065_v23  ;;  %v2068_v47 = vadd.f32 %v3797_v22, %v4858_v50  ;;  %vm2348_vm3 = vcmp.ge.s32.totalorder %v2342_v14, 0  ;;  %vm2354_vm0 = vcmp.lt.s32.totalorder %v2342_v14, 8 }
 0x32b   : > { %v2160_v28 = vmax.f32 %v2130_v8, 0.0  ;;  %v2133_v48 = vadd.f32 %v2132_v5, %v2068_v47  ;;  %v4941_v8 = vsel %vm4912_vm2, 1.0, %v5669_v30  ;;  %vm4959_vm2 = vmand %vm4934_vm12, %vm2361_vm6  ;;  %vm703_vm12 = vcmask 253952  }
 0x32c   : > { %v5008_v55 = vsel %vm4959_vm2, 1.0, %v5669_v30 }
 0x32d   : > { %v2176_v17 = vcombine.high %v2160_v28, %v2160_v28  ;;  %v2183_v20 = vrot.slane %v2160_v28, %v4867_v6  ;;  %v2161_v19 = vmax.f32 %v2133_v48, 0.0  ;;  %v2486_v48 = vrot.slane %v4941_v8, %v4870_v2 }
 0x32e   : > { %v2563_v46 = vrot.slane %v5008_v55, %v4875_v15  ;;  %v2577_v16 = vrot.slane %v5008_v55, %v4886_v1 }
 0x32f   : > { %v2190_v10 = vrot.slane %v2176_v17, %v4867_v6  ;;  %v2191_v32 = vcombine.high %v2183_v20, %v2183_v20  ;;  %v2193_v37 = vcombine.high %v2161_v19, %v2161_v19  ;;  %v2200_v40 = vrot.slane %v2161_v19, %v4867_v6 }
 0x330   : > { %v2685_v26 = vmul.f32 %v2451_v63, %v2183_v20  ;;  %v4968_v17 = vsel %vm4924_vm9, 1.0, %v5669_v30  ;;  %vm5012_vm9 = vmand %vm2348_vm3, %vm2354_vm0 }
 0x331   : > { %v2192_v52 = vcombine.high %v2190_v10, %v2190_v10  ;;  %v2686_v45 = vmul.f32 %v2458_v12, %v2191_v32  ;;  %v4900_v51 = vrot.slane %v2193_v37, %v4867_v6  ;;  %v4903_v53 = vcombine.high %v2200_v40, %v2200_v40  ;;  %vm2389_vm11 = vmand %vm5012_vm9, %vm2361_vm6 }
 0x332   : > { %v2687_v11 = vmul.f32 %v2465_v44, %v2190_v10  ;;  %v2689_v39 = vmul.f32 %v2479_v38, %v2200_v40  ;;  %v4973_v12 = vsel %vm2402_vm14, 1.0, %v5669_v30  ;;  %v2493_v44 = vrot.slane %v4941_v8, %v4875_v15  ;;  %vm2408_vm6 = vmand %vm5012_vm9, %vm2392_vm8 }
 0x333   : > { %v2688_v27 = vmul.f32 %v2472_v21, %v2192_v52  ;;  %v2745_v31 = vcombine.low %v2685_v26, %v2686_v45  ;;  %v3378_v3 = vcombine.low %v4903_v53, %v4900_v51  ;;  %v2500_v10 = vrot.slane %v4941_v8, %v4883_v42 }
 0x334   : > { %v2768_v47 = vrot.slane %v2689_v39, %v4867_v6  ;;  %v2507_v32 = vrot.slane %v4941_v8, %v4886_v1  ;;  %v2521_v37 = vrot.slane %v4948_v4, %v4870_v2  ;;  %v2528_v52 = vrot.slane %v4948_v4, %v4875_v15 }
 0x335   : > { %v2746_v5 = vcombine.low %v2687_v11, %v2688_v27  ;;  %v4930_v13 = vrot.slane %v3378_v3, %v4867_v6  ;;  %v2753_v23 = vrot.slane %v2745_v31, %v4867_v6  ;;  %v2514_v27 = vrot.slane %v4968_v17, %v4870_v2 }
 0x336   : > { %v2549_v3 = vrot.slane %v4973_v12, %v4870_v2  ;;  %v5025_v39 = vsel %vm4979_vm5, 1.0, %v5669_v30  ;;  %v2690_v43 = vmul.f32 %v2486_v48, %v4903_v53  ;;  %v2570_v53 = vrot.slane %v5008_v55, %v4883_v42 }
 0x337   : > { %v2760_v22 = vrot.slane %v2746_v5, %v4867_v6  ;;  %v5053_v48 = vsel %vm2406_vm10, 1.0, %v5669_v30  ;;  %v5057_v17 = vcombine.high %v4900_v51, %v4900_v51  ;;  %vm771_vm8 = vcmask 1046528  }
 0x338   : > { %vm802_vm14 = vcmask 1045504  }
 0x339   : > { %v2761_v9 = vcombine.low %v2753_v23, %v2760_v22  ;;  %v5036_v22 = vsel %vm4995_vm7, 1.0, %v5669_v30 }
 0x33b   : > { %v4970_v20 = vpack.c.bf16 %v2768_v47, %v2761_v9  ;;  %v2691_v9 = vmul.f32 %v2493_v44, %v4900_v51  ;;  %v2556_v47 = vrot.slane %v5008_v55, %v4870_v2  ;;  %v4019_v55 = vld [vmem:[%s5647_s6 + $0x50] sm:$0xff]  }
 0x33c   : > { %v3798_v63 = vpop.f32.mrb[4].mxu1  ;;  %v2137_v60 = vpop.f32.mrb[12].mxu0 }
 0x33d   : > { %v3799_v21 = vpop.f32.mrb[5].mxu1  ;;  %v2139_v40 = vpop.f32.mrb[13].mxu0  ;;  %2911 = vrot.lane.b32.xlu0 %v4970_v20, %s5682_s26  ;;  %v2947_v23 = vrot.slane %v4970_v20, 1  ;;  %v2769_v51 = vcombine.low %v2690_v43, %v2691_v9  ;;  %v2692_v43 = vmul.f32 %v2500_v10, %v5057_v17 }
 0x33e   : > { %v3800_v59 = vadd.f32 %v3799_v21, %v3798_v63  ;;  %v3801_v26 = vpop.f32.mrb[6].mxu1  ;;  %v2140_v45 = vpop.f32.mrb[14].mxu0 }
 0x33f   : > { %v3802_v31 = vpop.f32.mrb[7].mxu1  ;;  %v2142_v5 = vpop.f32.mrb[15].mxu0 }
 0x340   : > { %v2073_v57 = vadd.f32 %v3800_v59, %v4858_v50  ;;  %v3803_v14 = vadd.f32 %v3802_v31, %v3801_v26  ;;  %v5068_v26 = vsel %vm2389_vm11, 1.0, %v5669_v30 }
 0x341   : > { %2951 = vrot.lane.b32.xlu0 %v2947_v23, %s4134_s22 }
 0x342   : > { %v2138_v28 = vadd.f32 %v2137_v60, %v2073_v57  ;;  %v2076_v63 = vadd.f32 %v3803_v14, %v4858_v50 }
 0x344   : > { %v2162_v44 = vmax.f32 %v2138_v28, 0.0  ;;  %v2141_v21 = vadd.f32 %v2140_v45, %v2076_v63  ;;  %v3804_v40 = vpop.f32.mrb[8].mxu1  ;;  %v2145_v38 = vpop.f32.mrb[16].mxu0  ;;  %v5104_v45 = vrot.slane %v2769_v51, %v4867_v6 }
 0x345   : > { %v3805_v31 = vpop.f32.mrb[9].mxu1  ;;  %v2147_v5 = vpop.f32.mrb[17].mxu0 }
 0x346   : > { %v2210_v23 = vcombine.high %v2162_v44, %v2162_v44  ;;  %v5077_v28 = vrot.slane %v2162_v44, %v4867_v6  ;;  %v2163_v63 = vmax.f32 %v2141_v21, 0.0  ;;  %v3806_v7 = vadd.f32 %v3805_v31, %v3804_v40  ;;  %v3807_v62 = vpop.f32.mrb[10].mxu1  ;;  %v2148_v41 = vpop.f32.mrb[18].mxu0 }
 0x347   : > { %v3808_v9 = vpop.f32.mrb[11].mxu1  ;;  %v2150_v5 = vpop.f32.mrb[19].mxu0 }
 0x348   : > { %v5087_v44 = vrot.slane %v2210_v23, %v4867_v6  ;;  %v5091_v21 = vcombine.high %v5077_v28, %v5077_v28  ;;  %v2693_v10 = vmul.f32 %v2507_v32, %v5077_v28  ;;  %v2227_v40 = vcombine.high %v2163_v63, %v2163_v63 }
 0x349   : > { %v5098_v31 = vrot.slane %v2163_v63, %v4867_v6  ;;  %v2081_v5 = vadd.f32 %v3806_v7, %v4858_v50  ;;  %v3809_v34 = vadd.f32 %v3808_v9, %v3807_v62 }
 0x34a   : > { %v5108_v30 = vcombine.high %v5087_v44, %v5087_v44  ;;  %v2770_v14 = vcombine.low %v2692_v43, %v2693_v10  ;;  %v5113_v32 = vmul.f32 %v2514_v27, %v5091_v21  ;;  %v5116_v7 = vrot.slane %v2227_v40, %v4867_v6 }
 0x34b   : > { %v5120_v62 = vcombine.high %v5098_v31, %v5098_v31  ;;  %v2146_v51 = vadd.f32 %v2145_v38, %v2081_v5  ;;  %v2695_v63 = vmul.f32 %v2521_v37, %v5087_v44  ;;  %v2084_v9 = vadd.f32 %v3809_v34, %v4858_v50  ;;  %v4015_v34 = vld [vmem:[%s5647_s6 + $0x40] sm:$0xff]  }
 0x34c   : > { %v2696_v43 = vmul.f32 %v2528_v52, %v5108_v30  ;;  %v5131_v27 = vrot.slane %v2770_v14, %v4867_v6  ;;  %v3810_v10 = vpop.f32.mrb[12].mxu1  ;;  %v2153_v40 = vpop.f32.mrb[20].mxu0  ;;  %v2697_v38 = vmul.f32 %v2535_v33, %v5098_v31  ;;  %v5144_v52 = vcombine.high %v5116_v7, %v5116_v7  ;;  %3816 = vmatprep.subr.bf16.mxu1 %v4015_v34 }
 0x34d   : > { %v2698_v37 = vmul.f32 %v2542_v56, %v5120_v62  ;;  %v2164_v5 = vmax.f32 %v2146_v51, 0.0  ;;  %v3811_v14 = vpop.f32.mrb[13].mxu1  ;;  %v2155_v23 = vpop.f32.mrb[21].mxu0  ;;  %v2149_v57 = vadd.f32 %v2148_v41, %v2084_v9  ;;  %v4016_v56 = vld [vmem:[%s5647_s6] sm:$0xff]  }
 0x34e   : > { %v2793_v8 = vcombine.low %v2695_v63, %v2696_v43  ;;  %v3812_v59 = vadd.f32 %v3811_v14, %v3810_v10  ;;  %v3813_v33 = vpop.f32.mrb[14].mxu1  ;;  %v5149_v19 = vpop.f32.mrb[22].mxu0  ;;  %v2785_v4 = vcombine.low %v5104_v45, %v5131_v27  ;;  %v2699_v23 = vmul.f32 %v2549_v3, %v5116_v7  ;;  %3817 = vmatpush3.bf16.msra.mxu1 %v4016_v56 }
 0x34f   : > { %v2794_v51 = vcombine.low %v2697_v38, %v2698_v37  ;;  %v2244_v60 = vcombine.high %v2164_v5, %v2164_v5  ;;  %v5161_v41 = vrot.slane %v2164_v5, %v4867_v6  ;;  %v3814_v63 = vpop.f32.mrb[15].mxu1  ;;  %v2158_v43 = vpop.f32.mrb[23].mxu0  ;;  %v2700_v45 = vmul.f32 %v2556_v47, %v5144_v52  ;;  %v4017_v47 = vld [vmem:[%s5647_s6 + $0x48] sm:$0xff]  }
 0x350   : > { %v2801_v9 = vrot.slane %v2793_v8, %v4867_v6  ;;  %v2165_v27 = vmax.f32 %v2149_v57, 0.0  ;;  %v2089_v10 = vadd.f32 %v3812_v59, %v4858_v50  ;;  %v4018_v5 = vld [vmem:[%s5647_s6 + $0x8] sm:$0xff]   ;;  %3818 = vmatprep.subr.bf16.mxu1 %v4017_v47  ;;  %v4020_v47 = vld [vmem:[%s5647_s6 + $0x10] sm:$0xff]  }
 0x351   : > { %v2808_v12 = vrot.slane %v2794_v51, %v4867_v6  ;;  %v5171_v3 = vrot.slane %v2244_v60, %v4867_v6  ;;  %v5175_v38 = vcombine.high %v5161_v41, %v5161_v41  ;;  %v2701_v8 = vmul.f32 %v2563_v46, %v5161_v41 }
 0x352   : > { %v3426_v59 = vcombine.low %v5144_v52, %v5161_v41  ;;  %v2261_v57 = vcombine.high %v2165_v27, %v2165_v27  ;;  %v5187_v60 = vrot.slane %v2165_v27, %v4867_v6  ;;  %v2154_v37 = vadd.f32 %v2153_v40, %v2089_v10  ;;  %3819 = vmatpush3.bf16.msra.mxu1 %v4018_v5  ;;  %v4030_v52 = vld [vmem:[%s5647_s6 + $0x38] sm:$0xff]  }
 0x353   : > { %v2809_v14 = vcombine.low %v2801_v9, %v2808_v12  ;;  %v5194_v46 = vcombine.high %v5171_v3, %v5171_v3  ;;  %v2702_v34 = vmul.f32 %v2570_v53, %v5175_v38  ;;  %v2703_v56 = vmul.f32 %v2577_v16, %v5171_v3  ;;  %3820 = vmatprep.subr.bf16.mxu1 %v4019_v55 }
 0x354   : > { %v2817_v40 = vcombine.low %v2700_v45, %v2701_v8  ;;  %v5205_v51 = vrot.slane %v2261_v57, %v4867_v6  ;;  %v5209_v43 = vcombine.high %v5187_v60, %v5187_v60  ;;  %v2792_v9 = vrot.slane %v5113_v32, %v4867_v6 }
 0x355   : > { %v2816_v53 = vrot.slane %v2699_v23, %v4867_v6  ;;  %v2818_v27 = vcombine.low %v2702_v34, %v2703_v56  ;;  %v2166_v10 = vmax.f32 %v2154_v37, 0.0  ;;  %v3815_v12 = vadd.f32 %v3814_v63, %v3813_v33 }
 0x356   : > { %v5705_v16 = vrot.slane %v5025_v39, %v4870_v2  ;;  %v5223_v8 = vcombine.high %v5205_v51, %v5205_v51  ;;  %v5706_v32 = vrot.slane %v5036_v22, %v4870_v2  ;;  %v5707_v33 = vrot.slane %v5036_v22, %v4875_v15  ;;  %3821 = vmatpush3.bf16.msra.mxu1 %v4020_v47 }
 0x357   : > { %v2825_v39 = vrot.slane %v2817_v40, %v4867_v6  ;;  %v2832_v57 = vrot.slane %v2818_v27, %v4867_v6  ;;  %v2278_v5 = vcombine.high %v2166_v10, %v2166_v10  ;;  %v5708_v34 = vrot.slane %v5036_v22, %v4883_v42 }
 0x358   : > { %v2704_v45 = vmul.f32 %v5705_v16, %v5194_v46  ;;  %v2705_v23 = vmul.f32 %v5706_v32, %v5187_v60  ;;  %v2706_v63 = vmul.f32 %v5707_v33, %v5209_v43  ;;  %v5709_v16 = vrot.slane %v5036_v22, %v4886_v1  ;;  %v4021_v22 = vld [vmem:[%s5647_s6 + $0x58] sm:$0xff]  }
 0x359   : > { %v2707_v56 = vmul.f32 %v5708_v34, %v5205_v51  ;;  %v5249_v33 = vrot.slane %v2166_v10, %v4867_v6  ;;  %v2092_v40 = vadd.f32 %v3815_v12, %v4858_v50  ;;  %v2833_v27 = vcombine.low %v2825_v39, %v2832_v57  ;;  %3822 = vmatprep.subr.bf16.mxu1 %v4021_v22 }
 0x35a   : > { %v2708_v32 = vmul.f32 %v5709_v16, %v5223_v8  ;;  %v2292_v55 = vrot.slane %v2278_v5, %v4867_v6  ;;  %v5257_v34 = vpack.c.bf16 %v2792_v9, %v2785_v4  ;;  %v5259_v37 = vpack.c.bf16 %v2816_v53, %v2809_v14  ;;  %v4022_v4 = vld [vmem:[%s5647_s6 + $0x18] sm:$0xff]  }
 0x35b   : > { %v2841_v10 = vcombine.low %v2705_v23, %v2706_v63  ;;  %v2293_v18 = vcombine.high %v5249_v33, %v5249_v33  ;;  %v5710_v50 = vrot.slane %v5053_v48, %v4870_v2  ;;  %v5711_v9 = vrot.slane %v5068_v26, %v4875_v15  ;;  %3823 = vmatpush3.bf16.msra.mxu1 %v4022_v4 }
 0x35c   : > { %v2842_v16 = vcombine.low %v2707_v56, %v2708_v32  ;;  %v2294_v14 = vcombine.high %v2292_v55, %v2292_v55  ;;  %v2157_v12 = vadd.f32 %v5149_v19, %v2092_v40  ;;  %v5712_v23 = vmov 0.0   ;;  %2960 = vrot.lane.b32.xlu0 %v5257_v34, %s5679_s13  ;;  %2913 = vrot.lane.b32.xlu1 %v5257_v34, %s5682_s26 }
 0x35d   : > { %v2709_v11 = vmul.f32 %v5710_v50, %v5249_v33  ;;  %v2711_v53 = vmul.f32 %v5711_v9, %v2292_v55  ;;  %v3721_v63 = vsel %vm2408_vm6, 1.0, %v5712_v23  ;;  %v2840_v48 = vrot.slane %v2704_v45, %v4867_v6  ;;  %v4023_v45 = vld [vmem:[%s5647_s6 + $0x60] sm:$0xff]   ;;  %704 = vst.msk [vmem:[#allocation4] sm:$0x1] %vm703_vm12, %v5712_v23  ;;  %705 = vst.msk [vmem:[#allocation4 + $0x10] sm:$0x1] %vm703_vm12, %v5712_v23 }
 0x35e   : > { %v5713_v47 = vrot.slane %v5068_v26, %v4870_v2  ;;  %v2929_v15 = vshll.u32 %v5257_v34, 16  ;;  %v2167_v19 = vmax.f32 %v2157_v12, 0.0  ;;  %v5714_v5 = vrot.slane %v5068_v26, %v4883_v42  ;;  %v4024_v42 = vld [vmem:[%s5647_s6 + $0x20] sm:$0xff]   ;;  %3824 = vmatprep.subr.bf16.mxu1 %v4023_v45  ;;  %706 = vst.msk [vmem:[#allocation4 + $0x20] sm:$0x1] %vm703_vm12, %v5712_v23 }
 0x35f   : > { %v2864_v57 = vrot.slane %v2709_v11, %v4867_v6  ;;  %v2948_v32 = vrot.slane %v5257_v34, 1  ;;  %v2936_v40 = vshll.u32 %v5259_v37, 16  ;;  %v2849_v55 = vrot.slane %v2841_v10, %v4867_v6  ;;  %3825 = vmatpush3.bf16.msra.mxu1 %v4024_v42  ;;  %710 = vst.msk [vmem:[#allocation4 + $0x9] sm:$0x1] %vm703_vm12, %v5712_v23  ;;  %711 = vst.msk [vmem:[#allocation4 + $0x19] sm:$0x1] %vm703_vm12, %v5712_v23 }
 0x360   : > { %v2710_v39 = vmul.f32 %v5713_v47, %v2293_v18  ;;  %v2712_v56 = vmul.f32 %v5714_v5, %v2294_v14  ;;  %v2654_v50 = vrot.slane %v3721_v63, %v4870_v2  ;;  %v5298_v22 = vpack.c.bf16 %v2840_v48, %v2833_v27  ;;  %2985 = vrot.lane.b32.xlu0 %v5259_v37, %s4134_s22 }
 0x361   : > { %v2301_v11 = vrot.slane %v2167_v19, %v4867_v6  ;;  %2953 = vrot.lane.b32.xlu1 %v2948_v32, %s4134_s22  ;;  %v2856_v10 = vrot.slane %v2842_v16, %v4867_v6  ;;  %v5715_v2 = vcombine.low %v5057_v17, %v5077_v28  ;;  %v2931_v4 = vrot.slane %v2929_v15, 1  ;;  %v4025_v16 = vld [vmem:[%s5647_s6 + $0x68] sm:$0xff]   ;;  %712 = vst.msk [vmem:[#allocation4 + $0x29] sm:$0x1] %vm703_vm12, %v5712_v23 }
 0x362   : > { %v2865_v18 = vcombine.low %v2710_v39, %v2711_v53  ;;  %v5716_v9 = vrot.slane %v5068_v26, %v4886_v1  ;;  %v2938_v12 = vrot.slane %v2936_v40, 1  ;;  %v2927_v48 = vshrl.u32 %v5257_v34, 16  ;;  %v4026_v28 = vld [vmem:[%s5647_s6 + $0x28] sm:$0xff]   ;;  %3826 = vmatprep.subr.bf16.mxu1 %v4025_v16  ;;  %707 = vst.msk [vmem:[#allocation4 + $0x30] sm:$0x1] %vm703_vm12, %v5712_v23 }
 0x363   : > { %v3393_v27 = vrot.slane %v5715_v2, %v4867_v6  ;;  %v2302_v14 = vcombine.high %v2301_v11, %v2301_v11  ;;  %v2857_v63 = vcombine.low %v2849_v55, %v2856_v10  ;;  %v3401_v1 = vrot.slane %v5091_v21, %v4867_v6  ;;  %3827 = vmatpush3.bf16.msra.mxu1 %v4026_v28 }
 0x364   : > { %v2713_v53 = vmul.f32 %v5716_v9, %v2301_v11  ;;  %v2873_v17 = vrot.slane %v2865_v18, %v4867_v6  ;;  %2915 = vrot.lane.b32.xlu0 %v5259_v37, %s5682_s26  ;;  %v2934_v15 = vshrl.u32 %v5259_v37, 16  ;;  %v5337_v45 = vor.u32 %v2931_v4, %v2927_v48  ;;  %v4028_v18 = vld [vmem:[%s5647_s6 + $0x30] sm:$0xff]   ;;  %708 = vst.msk [vmem:[#allocation4 + $0x40] sm:$0x1] %vm703_vm12, %v5712_v23 }
 0x365   : > { %v3394_v47 = vcombine.low %v4930_v13, %v3393_v27  ;;  %v2714_v26 = vmul.f32 %v2654_v50, %v2302_v14  ;;  %2962 = vrot.lane.b32.xlu1 %v5259_v37, %s5679_s13  ;;  %v5333_v19 = vpack.c.bf16 %v2864_v57, %v2857_v63  ;;  %v3475_v40 = vrot.slane %v3401_v1, 1  ;;  %v4027_v57 = vld [vmem:[%s5647_s6 + $0x70] sm:$0xff]   ;;  %v5416_v1 = vld [vmem:[%s5647_s6 + $0x80] sm:$0xff]   ;;  %709 = vst.msk [vmem:[#allocation4 + $0x50] sm:$0x1] %vm703_vm12, %v5712_v23 }
 0x366   : > { %v2866_v39 = vcombine.low %v2712_v56, %v2713_v53  ;;  %v3402_v13 = vcombine.low %v5087_v44, %v5108_v30  ;;  %v5339_v21 = vor.u32 %v2938_v12, %v2934_v15  ;;  %v3403_v30 = vcombine.low %v5098_v31, %v5120_v62  ;;  %3828 = vmatprep.subr.bf16.mxu1 %v4027_v57 }
 0x367   : > { %v3474_v5 = vrot.slane %v3394_v47, 1  ;;  %v2888_v55 = vrot.slane %v2714_v26, %v4867_v6  ;;  %v3425_v11 = vrot.slane %v5116_v7, %v4867_v6  ;;  %v3427_v10 = vcombine.low %v5175_v38, %v5171_v3  ;;  %3829 = vmatpush3.bf16.msra.mxu1 %v4028_v18  ;;  %v4029_v3 = vld [vmem:[%s5647_s6 + $0x78] sm:$0xff]   ;;  %713 = vst.msk [vmem:[#allocation4 + $0x39] sm:$0x1] %vm703_vm12, %v5712_v23 }
 0x368   : > { %v2880_v56 = vrot.slane %v2866_v39, %v4867_v6  ;;  %v3410_v44 = vrot.slane %v3402_v13, %v4867_v6  ;;  %2975 = vrot.lane.b32.xlu0 %v5337_v45, %s5682_s26  ;;  %v3417_v2 = vrot.slane %v3403_v30, %v4867_v6  ;;  %v3434_v31 = vrot.slane %v3426_v59, %v4867_v6 }
 0x369   : > { %v5350_v50 = vsel %vm771_vm8, %v3474_v5, %v3475_v40  ;;  %2977 = vrot.lane.b32.xlu1 %v5339_v21, %s5682_s26  ;;  %v3449_v62 = vrot.slane %v5194_v46, %v4867_v6  ;;  %v3451_v27 = vcombine.low %v5205_v51, %v5223_v8  ;;  %v5373_v4 = vrot.slane %v5259_v37, 1  ;;  %3830 = vmatprep.subr.bf16.mxu1 %v4029_v3 }
 0x36a   : > { %v2881_v42 = vcombine.low %v2873_v17, %v2880_v56  ;;  %v3441_v38 = vrot.slane %v3427_v10, %v4867_v6  ;;  %v3418_v41 = vcombine.low %v3410_v44, %v3417_v2  ;;  %v5717_v59 = vcombine.low %v5187_v60, %v5209_v43  ;;  %714 = vst.msk [vmem:[#allocation4 + $0x49] sm:$0x1] %vm703_vm12, %v5712_v23 }
 0x36b   : > { %v3465_v51 = vrot.slane %v3451_v27, %v4867_v6  ;;  %v3478_v14 = vrot.slane %v3425_v11, 1  ;;  %v3473_v53 = vrot.slane %v5249_v33, %v4867_v6  ;;  %v2943_v12 = vshll.u32 %v5298_v22, 16  ;;  %3831 = vmatpush3.bf16.msra.mxu1 %v4030_v52  ;;  %715 = vst.msk [vmem:[#allocation4 + $0x59] sm:$0x1] %vm703_vm12, %v5712_v23 }
 0x36c   : > { %v5375_v7 = vpack.c.bf16 %v2888_v55, %v2881_v42  ;;  %v3458_v46 = vrot.slane %v5717_v59, %v4867_v6  ;;  %2955 = vrot.lane.b32.xlu0 %v5373_v4, %s4134_s22  ;;  %v3442_v8 = vcombine.low %v3434_v31, %v3441_v38  ;;  %v3477_v37 = vrot.slane %v3418_v41, 1  ;;  %3872 = vmatprep.subr.bf16.mxu1 %v5416_v1 }
 0x36d   : > { %2987 = vrot.lane.b32.xlu1 %v5298_v22, %s4134_s22  ;;  %v3481_v43 = vrot.slane %v3449_v62, 1  ;;  %v3484_v48 = vrot.slane %v3473_v53, 1  ;;  %v5410_v33 = vrot.slane %v5298_v22, 1  ;;  %v2945_v28 = vrot.slane %v2943_v12, 1 }
 0x36e   : > { %v3466_v9 = vcombine.low %v3458_v46, %v3465_v51  ;;  %v3480_v60 = vrot.slane %v3442_v8, 1  ;;  %v5397_v63 = vsel %vm771_vm8, %v3477_v37, %v3478_v14  ;;  %v2971_v47 = vshll.u32 %v5333_v19, 16 }
 0x36f   : > { %v2941_v26 = vshrl.u32 %v5298_v22, 16  ;;  %v2969_v5 = vshrl.u32 %v5333_v19, 16  ;;  %v2996_v13 = vshll.u32 %v5375_v7, 16  ;;  %v2994_v55 = vshrl.u32 %v5375_v7, 16 }
 0x370   : > { %v3483_v16 = vrot.slane %v3466_v9, 1  ;;  %3000 = vrot.lane.b32.xlu0 %v5339_v21, %s5679_s13  ;;  %v5404_v17 = vsel %vm771_vm8, %v3480_v60, %v3481_v43  ;;  %v2973_v15 = vrot.slane %v2971_v47, 1  ;;  %v2983_v57 = vrot.slane %v5333_v19, 1  ;;  %v4032_v60 = vld [vmem:[%s5647_s6 + $0x88] sm:$0xff]  }
 0x371   : > { %2917 = vrot.lane.b32.xlu1 %v5298_v22, %s5682_s26  ;;  %v5424_v39 = vor.u32 %v2945_v28, %v2941_v26  ;;  %v2998_v56 = vrot.slane %v2996_v13, 1  ;;  %v3008_v23 = vrot.slane %v5375_v7, 1 }
 0x372   : > { %v5407_v6 = vsel %vm771_vm8, %v3483_v16, %v3484_v48  ;;  %v2974_v40 = vor.u32 %v2973_v15, %v2969_v5 }
 0x374   : > { %2989 = vrot.lane.b32.xlu0 %v5333_v19, %s4134_s22 }
 0x375   : > { %2957 = vrot.lane.b32.xlu1 %v5410_v33, %s4134_s22 }
 0x378   : > { %2979 = vrot.lane.b32.xlu0 %v5424_v39, %s5682_s26 }
 0x379   : > { %3002 = vrot.lane.b32.xlu1 %v5424_v39, %s5679_s13 }
 0x37c   : > { %3004 = vrot.lane.b32.xlu0 %v2974_v40, %s5679_s13 }
 0x37d   : > { %2981 = vrot.lane.b32.xlu1 %v2974_v40, %s5682_s26 }
 0x380   : > { %2964 = vrot.lane.b32.xlu0 %v5298_v22, %s5679_s13  ;;  %v2999_v22 = vor.u32 %v2998_v56, %v2994_v55 }
 0x381   : > { %2991 = vrot.lane.b32.xlu1 %v5375_v7, %s4134_s22  ;;  %v2920_v7 = vshrl.u32 %v4970_v20, 16 }
 0x384   : > { %3009 = vrot.lane.b32.xlu0 %v5373_v4, %s5682_s26 }
 0x385   : > { %3006 = vrot.lane.b32.xlu1 %v2999_v22, %s5679_s13 }
 0x388   : > { %3013 = vrot.lane.b32.xlu0 %v2983_v57, %s5682_s26 }
 0x389   : > { %2966 = vrot.lane.b32.xlu1 %v5333_v19, %s5679_s13 }
 0x38c   : > { %722 = vrot.lane.b32.xlu0 %v4374_v36, %s5684_s17 }
 0x38d   : > { %3011 = vrot.lane.b32.xlu1 %v5410_v33, %s5682_s26 }
 0x390   : > { %726 = vrot.lane.b32.xlu0 %v4354_v29, %s5684_s17 }
 0x391   : > { %3015 = vrot.lane.b32.xlu1 %v3008_v23, %s5682_s26 }
 0x394   : > { %730 = vrot.lane.b32.xlu0 %v4403_v61, %s5684_s17 }
 0x395   : > { %724 = vrot.lane.b32.xlu1 %v4341_v24, %s5684_s17  ;;  %v2922_v24 = vshll.u32 %v4970_v20, 16 }
 0x399   : > { %728 = vrot.lane.b32.xlu1 %v4396_v54, %s5684_s17  ;;  %v2924_v54 = vrot.slane %v2922_v24, 1 }
 0x39b   : > { %v2925_v52 = vor.u32 %v2924_v54, %v2920_v7 }
 0x39d   : > { %732 = vrot.lane.b32.xlu1 %v4390_v49, %s5684_s17 }
 0x3af   : > { %v2912_v36 = vpop.permute.xlu0 %2911 }
 0x3b0   : > { %v3019_v51 = vsel %vm740_vm4, %v2912_v36, %v2925_v52 }
 0x3b3   : > { %v2952_v19 = vpop.permute.xlu0 %2951 }
 0x3ce   : > { %v2961_v18 = vpop.permute.xlu0 %2960  ;;  %v2914_v30 = vpop.permute.xlu1 %2913 }
 0x3cf   : > { %v3022_v41 = vsel %vm740_vm4, %v2914_v30, %v5337_v45 }
 0x3d2   : > { %v2986_v44 = vpop.permute.xlu0 %2985 }
 0x3d3   : > { %v2954_v29 = vpop.permute.xlu1 %2953 }
 0x3d4   : > { %v3032_v59 = vsel %vm1103_vm13, %v3022_v41, %v2954_v29 }
 0x3d6   : > { %v2916_v42 = vpop.permute.xlu0 %2915 }
 0x3d7   : > { %v2963_v11 = vpop.permute.xlu1 %2962  ;;  %v3025_v22 = vsel %vm740_vm4, %v2916_v42, %v5339_v21 }
 0x3d8   : > { %v3040_v8 = vsel %vm1077_vm1, %v3032_v59, %v2963_v11 }
 0x3da   : > { %v2976_v10 = vpop.permute.xlu0 %2975 }
 0x3db   : > { %v2978_v2 = vpop.permute.xlu1 %2977  ;;  %v3047_v38 = vsel %vm740_vm4, %v2976_v10, %v2948_v32  ;;  %v3030_v32 = vsel %vm1103_vm13, %v3019_v51, %v2952_v19 }
 0x3dc   : > { %v3050_v46 = vsel %vm740_vm4, %v2978_v2, %v5373_v4  ;;  %v3058_v37 = vsel %vm1103_vm13, %v3047_v38, %v2986_v44  ;;  %v3038_v53 = vsel %vm1077_vm1, %v3030_v32, %v2961_v18 }
 0x3dd   : > { %v3723_v4 = vcombine.low %v3038_v53, %v3040_v8 }
 0x3de   : > { %v2956_v61 = vpop.permute.xlu0 %2955 }
 0x3df   : > { %v2988_v31 = vpop.permute.xlu1 %2987  ;;  %v3034_v23 = vsel %vm1103_vm13, %v3025_v22, %v2956_v61 }
 0x3e0   : > { %v3060_v20 = vsel %vm1103_vm13, %v3050_v46, %v2988_v31 }
 0x3e2   : > { %v3001_v62 = vpop.permute.xlu0 %3000 }
 0x3e3   : > { %v2918_v27 = vpop.permute.xlu1 %2917  ;;  %v3066_v9 = vsel %vm1077_vm1, %v3058_v37, %v3001_v62 }
 0x3e6   : > { %v2990_v49 = vpop.permute.xlu0 %2989 }
 0x3e7   : > { %v2958_v3 = vpop.permute.xlu1 %2957 }
 0x3ea   : > { %v2980_v34 = vpop.permute.xlu0 %2979 }
 0x3eb   : > { %v3003_v14 = vpop.permute.xlu1 %3002  ;;  %v3053_v47 = vsel %vm740_vm4, %v2980_v34, %v5410_v33  ;;  %v3028_v33 = vsel %vm740_vm4, %v2918_v27, %v5424_v39 }
 0x3ec   : > { %v3068_v45 = vsel %vm1077_vm1, %v3060_v20, %v3003_v14  ;;  %v3062_v15 = vsel %vm1103_vm13, %v3053_v47, %v2990_v49 }
 0x3ed   : > { %v3724_v12 = vcombine.low %v3066_v9, %v3068_v45 }
 0x3ee   : > { %v3005_v43 = vpop.permute.xlu0 %3004 }
 0x3ef   : > { %3292 = vmatprep.mubr.bf16.mxu1 %v3724_v12  ;;  %v2982_v16 = vpop.permute.xlu1 %2981  ;;  %v3070_v56 = vsel %vm1077_vm1, %v3062_v15, %v3005_v43 }
 0x3f0   : > { %3293 = vmatmul.mubr.bf16.vlgmr.msra.gmra.mrb[16].mxu1 %v3723_v4  ;;  %v3056_v26 = vsel %vm740_vm4, %v2982_v16, %v2983_v57  ;;  %v3036_v57 = vsel %vm1103_vm13, %v3028_v33, %v2958_v3 }
 0x3f1   : > { %3873 = vmatpush3.bf16.msra.mxu1 %v5416_v1 }
 0x3f2   : > { %3874 = vmatprep.subr.bf16.mxu1 %v4032_v60  ;;  %v2965_v48 = vpop.permute.xlu0 %2964 }
 0x3f3   : > { %v2992_v28 = vpop.permute.xlu1 %2991  ;;  %v3042_v18 = vsel %vm1077_vm1, %v3034_v23, %v2965_v48 }
 0x3f4   : > { %v3064_v5 = vsel %vm1103_vm13, %v3056_v26, %v2992_v28 }
 0x3f5   : > { %3875 = vmatpush3.bf16.msra.mxu1 %v4032_v60 }
 0x3f6   : > { %v3010_v40 = vpop.permute.xlu0 %3009 }
 0x3f7   : > { %v3007_v13 = vpop.permute.xlu1 %3006 }
 0x3f8   : > { %v3072_v55 = vsel %vm1077_vm1, %v3064_v5, %v3007_v13 }
 0x3f9   : > { %v3727_v1 = vcombine.low %v3070_v56, %v3072_v55 }
 0x3fa   : > { %v3014_v36 = vpop.permute.xlu0 %3013 }
 0x3fb   : > { %3300 = vmatprep.mubr.bf16.mxu1 %v3727_v1  ;;  %v2967_v19 = vpop.permute.xlu1 %2966 }
 0x3fc   : > { %v3044_v30 = vsel %vm1077_vm1, %v3036_v57, %v2967_v19 }
 0x3fd   : > { %v3726_v44 = vcombine.low %v3042_v18, %v3044_v30 }
 0x3fe   : > { %v723_v29 = vpop.permute.xlu0 %722 }
 0x3ff   : > { %3301 = vmatmul.mubr.bf16.gmra.mrb[20].mxu1 %v3726_v44  ;;  %v3012_v11 = vpop.permute.xlu1 %3011  ;;  %741 = vst.msk [vmem:[#allocation4 + $0x1] sm:$0xff] %vm740_vm4, %v723_v29 }
 0x400   : > { %v3725_v21 = vcombine.low %v3010_v40, %v3012_v11 }
 0x402   : > { %3876 = vmatprep.mubr.msk.bf16.mxu1 %vm740_vm4, %v3725_v21  ;;  %v727_v39 = vpop.permute.xlu0 %726 }
 0x403   : > { %v3016_v42 = vpop.permute.xlu1 %3015  ;;  %743 = vst.msk [vmem:[#allocation4 + $0x21] sm:$0xff] %vm740_vm4, %v727_v39 }
 0x404   : > { %v3728_v10 = vcombine.low %v3014_v36, %v3016_v42 }
 0x406   : > { %v731_v2 = vpop.permute.xlu0 %730  ;;  %v747_v31 = vld [vmem:[#allocation4] sm:$0xff]  ;;  %v748_v24 = vld [vmem:[#allocation4 + $0x8] sm:$0x3] }
 0x407   : > { %3877 = vmatmul.mubr.msk.bf16.vlgmr.msra.gmra.mrb[24].mxu1 %vm740_vm4, %v3728_v10  ;;  %v725_v61 = vpop.permute.xlu1 %724  ;;  %745 = vst.msk [vmem:[#allocation4 + $0x41] sm:$0xff] %vm740_vm4, %v731_v2  ;;  %v772_v62 = vrot.slane %v747_v31, 1  ;;  %v773_v27 = vrot.slane %v748_v24, 1  ;;  %v803_v41 = vrot.slane %v747_v31, 2  ;;  %v804_v59 = vrot.slane %v748_v24, 2 }
 0x408   : > { %742 = vst.msk [vmem:[#allocation4 + $0x11] sm:$0xff] %vm740_vm4, %v725_v61 }
 0x409   : > { %v774_v52 = vsel %vm771_vm8, %v772_v62, %v773_v27  ;;  %v805_v43 = vsel %vm802_vm14, %v803_v41, %v804_v59 }
 0x40a   : > { %v751_v7 = vld [vmem:[#allocation4 + $0x20] sm:$0xff]  ;;  %v752_v49 = vld [vmem:[#allocation4 + $0x28] sm:$0x3]  ;;  %v796_v53 = vadd.f32 %v774_v52, %v747_v31 }
 0x40b   : > { %v729_v54 = vpop.permute.xlu1 %728  ;;  %v778_v3 = vrot.slane %v751_v7, 1  ;;  %v779_v38 = vrot.slane %v752_v49, 1  ;;  %v809_v16 = vrot.slane %v751_v7, 2  ;;  %v810_v48 = vrot.slane %v752_v49, 2 }
 0x40c   : > { %744 = vst.msk [vmem:[#allocation4 + $0x31] sm:$0xff] %vm740_vm4, %v729_v54  ;;  %v827_v22 = vadd.f32 %v805_v43, %v796_v53  ;;  %v3665_v54 = vld [vmem:[%s5644_s3] ss:$0 sm:$0xff] }
 0x40d   : > { %v780_v20 = vsel %vm771_vm8, %v778_v3, %v779_v38  ;;  %v811_v36 = vsel %vm802_vm14, %v809_v16, %v810_v48 }
 0x40e   : > { %v755_v37 = vld [vmem:[#allocation4 + $0x40] sm:$0xff]  ;;  %v756_v45 = vld [vmem:[#allocation4 + $0x48] sm:$0x3]  ;;  %v798_v47 = vadd.f32 %v780_v20, %v751_v7 }
 0x40f   : > { %v733_v46 = vpop.permute.xlu1 %732  ;;  %v749_v51 = vld [vmem:[#allocation4 + $0x10] sm:$0xff]  ;;  %v750_v8 = vld [vmem:[#allocation4 + $0x18] sm:$0x3]  ;;  %v784_v12 = vrot.slane %v755_v37, 1  ;;  %v785_v4 = vrot.slane %v756_v45, 1  ;;  %v815_v23 = vrot.slane %v755_v37, 2 }
 0x410   : > { %746 = vst.msk [vmem:[#allocation4 + $0x51] sm:$0xff] %vm740_vm4, %v733_v46  ;;  %v775_v34 = vrot.slane %v749_v51, 1  ;;  %v776_v14 = vrot.slane %v750_v8, 1  ;;  %v806_v32 = vrot.slane %v749_v51, 2  ;;  %v807_v9 = vrot.slane %v750_v8, 2 }
 0x411   : > { %v786_v40 = vsel %vm771_vm8, %v784_v12, %v785_v4  ;;  %v816_v57 = vrot.slane %v756_v45, 2  ;;  %v829_v30 = vadd.f32 %v811_v36, %v798_v47 }
 0x412   : > { %v777_v60 = vsel %vm771_vm8, %v775_v34, %v776_v14  ;;  %v808_v26 = vsel %vm802_vm14, %v806_v32, %v807_v9  ;;  %v800_v18 = vadd.f32 %v786_v40, %v755_v37 }
 0x413   : > { %v797_v28 = vadd.f32 %v777_v60, %v749_v51  ;;  %v753_v15 = vld [vmem:[#allocation4 + $0x30] sm:$0xff]  ;;  %v754_v5 = vld [vmem:[#allocation4 + $0x38] sm:$0x3]  ;;  %v817_v27 = vsel %vm802_vm14, %v815_v23, %v816_v57 }
 0x414   : > { %v781_v13 = vrot.slane %v753_v15, 1  ;;  %v782_v56 = vrot.slane %v754_v5, 1  ;;  %v812_v55 = vrot.slane %v753_v15, 2  ;;  %v813_v1 = vrot.slane %v754_v5, 2 }
 0x415   : > { %v828_v33 = vadd.f32 %v808_v26, %v797_v28  ;;  %v831_v7 = vadd.f32 %v817_v27, %v800_v18 }
 0x416   : > { %v783_v19 = vsel %vm771_vm8, %v781_v13, %v782_v56  ;;  %v814_v11 = vsel %vm802_vm14, %v812_v55, %v813_v1 }
 0x417   : > { %v833_v44 = vadd.f32 %v828_v33, %v827_v22  ;;  %v799_v29 = vadd.f32 %v783_v19, %v753_v15  ;;  %v757_v21 = vld [vmem:[#allocation4 + $0x50] sm:$0xff]  ;;  %v758_v39 = vld [vmem:[#allocation4 + $0x58] sm:$0x3]  ;;  %v834_v62 = vadd.f32 %v829_v30, %v828_v33 }
 0x418   : > { %v787_v42 = vrot.slane %v757_v21, 1  ;;  %v788_v10 = vrot.slane %v758_v39, 1  ;;  %v818_v2 = vrot.slane %v757_v21, 2  ;;  %v819_v61 = vrot.slane %v758_v39, 2 }
 0x419   : > { %v837_v31 = vadd.f32 %v833_v44, %v829_v30  ;;  %v830_v24 = vadd.f32 %v814_v11, %v799_v29 }
 0x41a   : > { %v789_v49 = vsel %vm771_vm8, %v787_v42, %v788_v10  ;;  %v820_v59 = vsel %vm802_vm14, %v818_v2, %v819_v61 }
 0x41b   : > { %v841_v3 = vmul.f32 0.11111111, %v837_v31  ;;  %v838_v38 = vadd.f32 %v834_v62, %v830_v24  ;;  %v835_v52 = vadd.f32 %v830_v24, %v829_v30  ;;  %v801_v41 = vadd.f32 %v789_v49, %v757_v21 }
 0x41c   : > { %v836_v46 = vadd.f32 %v831_v7, %v830_v24 }
 0x41d   : > { %v852_v51 = vadd.f32 %v3665_v54, %v841_v3  ;;  %v842_v8 = vmul.f32 0.11111111, %v838_v38  ;;  %v839_v20 = vadd.f32 %v835_v52, %v831_v7  ;;  %v832_v37 = vadd.f32 %v820_v59, %v801_v41 }
 0x41e   : > { %v5719_v38 = vmax.f32 %v4372_v35, 0.0 }
 0x41f   : > { %v856_v34 = vmax.f32 %v852_v51, 0.0  ;;  %v853_v14 = vadd.f32 %v3665_v54, %v842_v8  ;;  %v843_v32 = vmul.f32 0.11111111, %v839_v20  ;;  %v840_v9 = vadd.f32 %v836_v46, %v832_v37 }
 0x420   : > { %v5721_v37 = vmax.f32 %v4410_v0, 0.0 }
 0x421   : > { %3366 = vrot.lane.b32.xlu0 %v856_v34, %s4134_s22  ;;  %v857_v45 = vmax.f32 %v853_v14, 0.0  ;;  %v854_v53 = vadd.f32 %v3665_v54, %v843_v32  ;;  %v844_v12 = vmul.f32 0.11111111, %v840_v9 }
 0x423   : > { %3368 = vrot.lane.b32.xlu1 %v857_v45, %s4134_s22  ;;  %v858_v4 = vmax.f32 %v854_v53, 0.0  ;;  %v855_v60 = vadd.f32 %v3665_v54, %v844_v12  ;;  %v5718_v54 = vmax.f32 %v4345_v25, 0.0  ;;  %v5720_v25 = vmax.f32 %v4400_v58, 0.0 }
 0x425   : > { %3370 = vrot.lane.b32.xlu0 %v858_v4, %s4134_s22  ;;  %v859_v43 = vmax.f32 %v855_v60, 0.0 }
 0x427   : > { %3372 = vrot.lane.b32.xlu1 %v859_v43, %s4134_s22  ;;  %s4146_s22 = smov [#allocation6]  }
 0x428   : > { %s4037_s21 = sshll.u32 %s4146_s22, 4  ;;  %s4038_s21 = int_to_ptr.vmem [resolvable:$false] %s4037_s21 }
 0x429   : > { %3486 = vrot.lane.b32.xlu0 %v5350_v50, %s5679_s13 }
 0x42b   : > { %3488 = vrot.lane.b32.xlu1 %v5397_v63, %s5679_s13  ;;  %v3722_v63 = vld [vmem:[%s5648_s7] ss:$0 sm:$0xff] }
 0x42d   : > { %3490 = vrot.lane.b32.xlu0 %v5404_v17, %s5679_s13 }
 0x42f   : > { %3492 = vrot.lane.b32.xlu1 %v5407_v6, %s5679_s13  ;;  %s3751_s13 = sshll.u32 %s4117_s9, 3 }
 0x430   : > { %s3543_s15 = sadd.s32 %s3751_s13, %s4267_s25  ;;  %s4039_s13 = scalar_lea.vmem %s4038_s21, 1024 }
 0x431   : > { %s3752_s9 = sshll.u32 %s3543_s15, 7 }
 0x432   : > { %s5579_s17 = scalar_lea.hbm %s5649_s8, %s3752_s9 }
 0x493   : > { %v3367_v42 = vpop.permute.xlu0 %3366 }
 0x494   : > { %v3514_v7 = vsel %vm740_vm4, %v5718_v54, %v3367_v42 }
 0x495   : > { %v3369_v10 = vpop.permute.xlu1 %3368 }
 0x496   : > { %v3515_v52 = vsel %vm740_vm4, %v5719_v38, %v3369_v10 }
 0x497   : > { %v3371_v2 = vpop.permute.xlu0 %3370 }
 0x498   : > { %v3516_v51 = vsel %vm740_vm4, %v5720_v25, %v3371_v2 }
 0x499   : > { %v3373_v61 = vpop.permute.xlu1 %3372 }
 0x49a   : > { %v3517_v34 = vsel %vm740_vm4, %v5721_v37, %v3373_v61 }
 0x49b   : > { %v3487_v31 = vpop.permute.xlu0 %3486 }
 0x49c   : > { %v3518_v49 = vsel %vm1103_vm13, %v3514_v7, %v3487_v31 }
 0x49d   : > { %v3489_v24 = vpop.permute.xlu1 %3488 }
 0x49e   : > { %v3519_v59 = vsel %vm1103_vm13, %v3515_v52, %v3489_v24 }
 0x49f   : > { %v3491_v62 = vpop.permute.xlu0 %3490 }
 0x4a0   : > { %v3520_v35 = vsel %vm1103_vm13, %v3516_v51, %v3491_v62 }
 0x4a1   : > { %v3493_v27 = vpop.permute.xlu1 %3492 }
 0x4a2   : > { %v3521_v58 = vsel %vm1103_vm13, %v3517_v34, %v3493_v27 }
 0x4c3   : > { %v3832_v16 = vpop.f32.mrb[16].mxu1 }
 0x4c4   : > { %v3833_v48 = vpop.f32.mrb[17].mxu1 }
 0x4c5   : > { %v3834_v28 = vadd.f32 %v3833_v48, %v3832_v16  ;;  %v3835_v47 = vpop.f32.mrb[18].mxu1 }
 0x4c6   : > { %v3836_v26 = vpop.f32.mrb[19].mxu1 }
 0x4c7   : > { %v3837_v15 = vadd.f32 %v3836_v26, %v3835_v47  ;;  %v3295_v22 = vadd.f32 %v3834_v28, %v3722_v63 }
 0x4c9   : > { %v3298_v19 = vadd.f32 %v3837_v15, %v3722_v63 }
 0x4d2   : > { %v3838_v5 = vpop.f32.mrb[20].mxu1 }
 0x4d3   : > { %v3839_v40 = vpop.f32.mrb[21].mxu1 }
 0x4d4   : > { %v3840_v13 = vadd.f32 %v3839_v40, %v3838_v5  ;;  %v3841_v56 = vpop.f32.mrb[22].mxu1 }
 0x4d5   : > { %v3842_v50 = vpop.f32.mrb[23].mxu1 }
 0x4d6   : > { %v3843_v55 = vadd.f32 %v3842_v50, %v3841_v56  ;;  %v3303_v17 = vadd.f32 %v3840_v13, %v3722_v63 }
 0x4d8   : > { %v3306_v23 = vadd.f32 %v3843_v55, %v3722_v63 }
 0x4da   : > { %v3878_v1 = vpop.f32.mrb[24].mxu1 }
 0x4db   : > { %v3352_v6 = vadd.f32 %v3878_v1, %v3303_v17  ;;  %v3343_v33 = vpop.f32.mrb[25].mxu1 }
 0x4dc   : > { %v3344_v57 = vadd.f32 %v3343_v33, %v3295_v22  ;;  %v3879_v36 = vpop.f32.mrb[26].mxu1 }
 0x4dd   : > { %v3355_v18 = vadd.f32 %v3879_v36, %v3306_v23  ;;  %v3346_v30 = vpop.f32.mrb[27].mxu1  ;;  %v3360_v21 = vmax.f32 %v3352_v6, 0.0 }
 0x4de   : > { %v3358_v44 = vmax.f32 %v3344_v57, 0.0  ;;  %v3347_v29 = vadd.f32 %v3346_v30, %v3298_v19 }
 0x4df   : > { %v3361_v39 = vmax.f32 %v3355_v18, 0.0 }
 0x4e0   : > { %v3359_v11 = vmax.f32 %v3347_v29, 0.0  ;;  %3502 = vrot.lane.b32.xlu0 %v3358_v44, %s5682_s26 }
 0x4e2   : > { %3504 = vrot.lane.b32.xlu1 %v3359_v11, %s5682_s26 }
 0x4e4   : > { %3506 = vrot.lane.b32.xlu0 %v3360_v21, %s5682_s26 }
 0x4e6   : > { %3508 = vrot.lane.b32.xlu1 %v3361_v39, %s5682_s26  ;;  %s3546_s26 = sshll.u32 %s4276_s30, 4  ;;  %s5581_s26 = int_to_ptr.vmem [resolvable:$true] %s3546_s26 }
 0x4e7   : > { %s4033_s24 = scalar_lea.vmem %s5581_s26, 512  ;;  %p4040_p1 = scmp.lt.s32.totalorder %s5581_s26, %s4038_s21 }
 0x4e8   : > { %p4034_p12 = scmp.ne.s32.totalorder %s5581_s26, %s4033_s24  ;;  %p4041_p2 = scmp.lt.s32.totalorder %s4039_s13, %s4033_s24 }
 0x4ea   : > { %p4035_p13 = pnand %p4034_p12, %p4245_p3  ;;  %p4042_p4 = por %p4041_p2, %p4040_p1 }
 0x4ec   : > { %p4036_p0 = pneg %p4035_p13 }
 0x4ee   : > { %p4043_p5 = pnand %p4042_p4, %p4036_p0 }
 0x552   : > { %v3503_v3 = vpop.permute.xlu0 %3502 }
 0x553   : > { %v3522_v41 = vsel %vm1077_vm1, %v3518_v49, %v3503_v3 }
 0x554   : > { %3526 = vst [vmem:[%s4276_s30] sm:$0xff] %v3522_v41  ;;  %v3505_v46 = vpop.permute.xlu1 %3504 }
 0x555   : > { %v3523_v8 = vsel %vm1077_vm1, %v3519_v59, %v3505_v46 }
 0x556   : > { %3527 = vst [vmem:[%s4276_s30 + $0x8] sm:$0xff] %v3523_v8  ;;  %v3507_v20 = vpop.permute.xlu0 %3506 }
 0x557   : > { %v3524_v14 = vsel %vm1077_vm1, %v3520_v35, %v3507_v20 }
 0x558   : > { %3528 = vst [vmem:[%s4276_s30 + $0x10] sm:$0xff] %v3524_v14  ;;  %v3509_v32 = vpop.permute.xlu1 %3508 }
 0x559   : > { %v3525_v0 = vsel %vm1077_vm1, %v3521_v58, %v3509_v32 }
 0x55a   : > { %3529 = vst [vmem:[%s4276_s30 + $0x18] sm:$0xff] %v3525_v0 }
 0x55b   : > { %4046 = shalt.err (!%p4043_p5)
}
 0x55c   : > { %s4047_s30 = scalar_lea.hbm %s5579_s17, 512  ;;  %s4051_s25 = scalar_lea.hbm %s5649_s8, 2048 }
 0x55d   : > { %p4048_p6 = scmp.ne.s32.totalorder %s5579_s17, %s4047_s30  ;;  %p4052_p10 = scmp.lt.u32.totalorder %s5579_s17, %s5649_s8 }
 0x55e   : > { %p4053_p11 = scmp.lt.u32.totalorder %s4051_s25, %s4047_s30  ;;  %p4055_p13 = scmp.lt.u32.totalorder %s4047_s30, %s5579_s17 }
 0x55f   : > { %p4049_p7 = pnand %p4048_p6, %p4245_p3 }
 0x560   : > { %p4054_p12 = por %p4053_p11, %p4052_p10 }
 0x561   : > { %p4050_p9 = pneg %p4049_p7 }
 0x562   : > { %p4056_p0 = por %p4055_p13, %p4054_p12 }
 0x564   : > { %p4057_p1 = pnand %p4056_p0, %p4050_p9 }
 0x566   : > { %4060 = shalt.err (!%p4057_p1)
}
 0x567   : > { %s4147_s24 = smov 128   ;;  %s4148_s22 = smov 8  }
 0x568   : > { %3880 = dma.vmem_to_hbm [thread:$0]  (%p4245_p3), %s5581_s26, 512, %s5579_s17, %s5589_s16, %s4147_s24, %s4147_s24, %s4148_s22  }
 0x569 PF: > { %p3886_p2 = scmp.ge.s32.totalorder %s4129_s12, 2  ;;  %s3561_s21 = sand.u32 1, %s4101_s27  }
 0x56a   : > { %s3562_s13 = scalar_lea.sflag [#allocation7], %s3561_s21 }
 0x56b   : > { %p3883_p4 = pnand %p3886_p2, %p4254_p8 }
 0x56d   : > { %4096 = dma.done.wait (!%p3883_p4), %s3562_s13, 512  }
 0x56e   : > { %4098 = vsyncadd (!%p3883_p4), %s3562_s13, 4294966784  ;;  %s21_s12 = sadd.s32 1, %s4129_s12   ;;  %s5723_s18 = sld [smem:[#allocation11_spill]] }
 0x56f   : > { %p18_p5 = scmp.ge.s32.totalorder %s21_s12, 6   ;;  %s5724_s26 = sld [smem:[#allocation12_spill]] }
 0x570   : > { %s5725_s27 = smov %s4105_s28  ;;  %s5726_s28 = smov %s4109_s29 }
 0x571   : > { %s5727_s29 = smov %s4263_s23  ;;  %s5728_s30 = smov %s4121_s10 }
 0x572   : > { %s5729_s9 = smov %s4125_s11  ;;  %20 = sbr.rel (!%p18_p5) target bundleno = 5 (0x5), region = 123 }
 0x574   : > { %s5730_s10 = smov %s5723_s18 }
 0x575   : > { %s5731_s11 = smov %s5724_s26 }
 0x579   :  { %3567 = vsyncpa [#allocation7], 1 }
 0x57a   :  { %3569 = vsyncpa [#allocation7 + $0x1], 1 }
 0x57b   :  { %3570 = vsyncmov [#allocation5] }
 0x57e   :  { %s3571_s19 = vpop.sfrf %3570 }
 0x57f   :  { %p3755_p3 = scmp.ne.s32.totalorder %s3571_s19, 0 }
 0x581   :  { %3575 = shalt.err (%p3755_p3)  }

</bundles_post_ra>
